<compile_context>
chip_gen: v6e
topology: v6e:2x2x1
jax: 0.10.0
libtpu: 0.0.40
codegen_flags: <defaults>
</compile_context>

<pallas_src>
import math
import numpy as np
import jax
import jax.numpy as jnp
from jax import lax
from jax.experimental import pallas as pl
from jax.experimental.pallas import tpu as pltpu

# ---------------- configuration (small, deterministic) ----------------
B = 2            # batch
L = 8            # sequence length
E = 16           # embedding_size
H = 32           # hidden_size
NUM_LAYERS = 2
NUM_HEADS = 4
DK = 32          # total_key_depth
DV = 32          # total_value_depth
FILTER = 64      # filter_size
MAX_LEN = 100
EPS = 1e-6
NEG_INF = -1e18
DKH = DK // NUM_HEADS
DVH = DV // NUM_HEADS
QSCALE = DKH ** -0.5
BL = B * L       # folded (batch * seq) rows

# ---------------- slab layouts (static row offsets, 128-lane dense) ----------
LANES = 128
# const slab: [ per-call x | static middle (built once) | per-call attn bias ]
R_X     = 0                         # (BL, E)     folded input
R_TIM   = R_X + BL                  # (BL, H)     timing signal per folded row
R_WEMB  = R_TIM + BL                # (E, H)      embedding_proj weight (W.T)
R_BPREV = R_WEMB + E                # (BL, 1)     0 at sequence-start rows
R_BNEXT = R_BPREV + BL              # (BL, 1)     0 at sequence-end rows
R_LNFG  = R_BNEXT + BL              # (1, H)      final LayerNorm gamma (8-row pad)
R_LNFB  = R_LNFG + 8                # (1, H)      final LayerNorm beta  (8-row pad)
R_HMASK = R_LNFB + 8                # (NH*BL, DK) per-head lane mask
R_BIAS  = R_HMASK + NUM_HEADS * BL  # (NH*BL, BL) additive attention bias
C_ROWS  = R_BIAS + NUM_HEADS * BL   # = 224

# per-layer weight block inside the layer slab
LR_MISC = 0                         # rows 0..5: ln1g, ln1b, ln2g, ln2b, bc1, bc2
LR_WQKV = 8                         # (H, 3*DK)      Q (pre-scaled) | K | V
LR_WO   = LR_WQKV + H               # (DV, H)
LR_WC1  = LR_WO + DV                # (3*H, FILTER)  conv1 taps packed along K
LR_WC2  = LR_WC1 + 3 * H            # (3*FILTER, H)  conv2 taps packed along K
ROWS_PER_LAYER = LR_WC2 + 3 * FILTER   # = 360 (multiple of 8)


def _gen_timing_signal(length, channels, min_timescale=1.0, max_timescale=1.0e4):
    position = np.arange(length)
    num_timescales = channels // 2
    log_timescale_increment = (math.log(float(max_timescale) / float(min_timescale))
                               / (float(num_timescales) - 1))
    inv_timescales = min_timescale * np.exp(
        np.arange(num_timescales).astype(np.float64) * -log_timescale_increment)
    scaled_time = np.expand_dims(position, 1) * np.expand_dims(inv_timescales, 0)
    signal = np.concatenate([np.sin(scaled_time), np.cos(scaled_time)], axis=1)
    signal = np.pad(signal, [[0, 0], [0, channels % 2]], 'constant')
    return signal.reshape([1, length, channels]).astype(np.float32)


# ---------------- in-kernel helpers ----------------
def _layernorm(x, g, b):
    # Matches the custom LayerNorm: torch .std() is unbiased (ddof=1) and the
    # normalization is (x - mean) / (std + eps).  Exact divide (EUP) -- the
    # kernel is latency-bound, the approx reciprocal buys nothing here.
    mean = jnp.mean(x, axis=-1, keepdims=True)
    d = x - mean
    var = jnp.sum(d * d, axis=-1, keepdims=True) * (1.0 / (x.shape[-1] - 1))
    return g * (d / (jnp.sqrt(var) + EPS)) + b


# ---------------- the fused encoder kernel (single invocation, no grid) -------
def encoder_kernel(c_ref, w_ref, out_ref):
    f32 = jnp.float32
    # ---- carve the const slab (static Ref slices; loop-invariant, loaded once)
    x_in   = c_ref[R_X:R_X + BL, 0:E]
    timing = c_ref[R_TIM:R_TIM + BL, 0:H]
    wemb   = c_ref[R_WEMB:R_WEMB + E, 0:H]
    bprev  = c_ref[R_BPREV:R_BPREV + BL, 0:1]
    bnext  = c_ref[R_BNEXT:R_BNEXT + BL, 0:1]
    lnfg   = c_ref[R_LNFG:R_LNFG + 1, 0:H]
    lnfb   = c_ref[R_LNFB:R_LNFB + 1, 0:H]
    hmask  = c_ref[R_HMASK:R_HMASK + NUM_HEADS * BL, 0:DK]
    bias   = c_ref[R_BIAS:R_BIAS + NUM_HEADS * BL, 0:BL]

    # embedding_proj (no bias) + timing signal
    x = jnp.dot(x_in, wemb, preferred_element_type=f32) + timing

    # NOTE: operands stay f32 -- with K<=192 / N<=128 bf16 does not cut MXU
    # passes and the kernel is launch/latency bound, not MXU-throughput bound.
    # (Optional, measure-first: pad Q/K/V segments of wqkv to 128-lane
    #  boundaries if lane rotates from the qkv slices ever show on the path.)
    for l in range(NUM_LAYERS):        # static unroll -> static slab offsets
        base = l * ROWS_PER_LAYER
        misc = w_ref[base + LR_MISC:base + LR_MISC + 8, :]   # one aligned load
        ln1g = misc[0:1, 0:H]
        ln1b = misc[1:2, 0:H]
        ln2g = misc[2:3, 0:H]
        ln2b = misc[3:4, 0:H]
        bc1  = misc[4:5, 0:FILTER]
        bc2  = misc[5:6, 0:H]
        wqkv = w_ref[base + LR_WQKV:base + LR_WQKV + H, 0:3 * DK]
        wo   = w_ref[base + LR_WO:base + LR_WO + DV, 0:H]
        wc1  = w_ref[base + LR_WC1:base + LR_WC1 + 3 * H, 0:FILTER]
        wc2  = w_ref[base + LR_WC2:base + LR_WC2 + 3 * FILTER, 0:H]

        # ---- multi-head self-attention (pre-LN, residual) ----
        xn = _layernorm(x, ln1g, ln1b)
        qkv = jnp.dot(xn, wqkv, preferred_element_type=f32)       # (BL, 3*DK)
        q = qkv[:, 0:DK]              # Q columns pre-scaled by d_k^-0.5
        k = qkv[:, DK:2 * DK]
        v = qkv[:, 2 * DK:3 * DK]

        # heads stacked along sublanes (aligned concat == plain vreg placement);
        # per-head lane mask on Q so one softmax covers every (head, row) pair.
        q_st = jnp.concatenate([q, q, q, q], axis=0) * hmask      # (NH*BL, DK)
        logits = lax.dot_general(q_st, k, (((1,), (1,)), ((), ())),
                                 preferred_element_type=f32) + bias   # (NH*BL, BL)
        m = jnp.max(logits, axis=-1, keepdims=True)
        e = jnp.exp(logits - m)
        w = e * pl.reciprocal(jnp.sum(e, axis=-1, keepdims=True), approx=True)
        ctx = jnp.dot(w, v, preferred_element_type=f32)           # (NH*BL, DV)

        # collapse heads: mask ctx to its head's lanes, sum head blocks (VPU),
        # then ONE unmasked (DV,H) output projection.
        ctxm = ctx * hmask                                        # DVH == DKH
        cpack = ctxm[0:BL]
        for h in range(1, NUM_HEADS):
            cpack = cpack + ctxm[h * BL:(h + 1) * BL]             # (BL, DV)
        x = x + jnp.dot(cpack, wo, preferred_element_type=f32)

        # ---- positionwise FFN ('cc': two k=3 'same' convs along the seq) ----
        # row shifts via XLU rolls + boundary masks (the masks also zero rows
        # that would cross a batch boundary in the folded layout); the 3 conv
        # taps are fused into one matmul against K-packed weights.
        xn = _layernorm(x, ln2g, ln2b)
        xp = pltpu.roll(xn, 1, 0) * bprev          # row r <- xn[r-1]
        xm = pltpu.roll(xn, BL - 1, 0) * bnext     # row r <- xn[r+1]
        h1 = jnp.dot(jnp.concatenate([xp, xn, xm], axis=-1), wc1,
                     preferred_element_type=f32) + bc1
        h1 = jnp.maximum(h1, 0.0)
        hp = pltpu.roll(h1, 1, 0) * bprev
        hm = pltpu.roll(h1, BL - 1, 0) * bnext
        h2 = jnp.dot(jnp.concatenate([hp, h1, hm], axis=-1), wc2,
                     preferred_element_type=f32) + bc2
        # NOTE: reference FFN applies ReLU after the *last* conv too
        # ("if i < len(self.layers)" is always true) -- reproduced here.
        h2 = jnp.maximum(h2, 0.0)
        x = x + h2

    out_ref[...] = _layernorm(x, lnfg, lnfb).astype(out_ref.dtype)


# ---------------- packing (one-time) and jitted wrapper ----------------
def _pad_lanes(a):
    a = jnp.asarray(a, jnp.float32)
    return jnp.pad(a, ((0, 0), (0, LANES - a.shape[-1])))


def pack_params(p):
    """One-time packing of all weights / constants into the two kernel slabs."""
    # ---- per-layer weight slab (NL * ROWS_PER_LAYER, 128) ----
    blocks = []
    for l in range(NUM_LAYERS):
        misc = jnp.zeros((8, LANES), jnp.float32)
        misc = misc.at[0, :H].set(p['ln1g'][l])
        misc = misc.at[1, :H].set(p['ln1b'][l])
        misc = misc.at[2, :H].set(p['ln2g'][l])
        misc = misc.at[3, :H].set(p['ln2b'][l])
        misc = misc.at[4, :FILTER].set(p['bc1'][l])
        misc = misc.at[5, :H].set(p['bc2'][l])
        wqkv = jnp.concatenate([p['wq'][l] * QSCALE, p['wk'][l], p['wv'][l]], axis=-1)
        blocks.append(jnp.concatenate(
            [misc,
             _pad_lanes(wqkv),                                   # (H, 3*DK)
             _pad_lanes(p['wo'][l]),                             # (DV, H)
             _pad_lanes(p['wc1'][l].reshape(3 * H, FILTER)),     # taps packed on K
             _pad_lanes(p['wc2'][l].reshape(3 * FILTER, H))],
            axis=0))
    layer_slab = jnp.concatenate(blocks, axis=0)
    assert layer_slab.shape == (NUM_LAYERS * ROWS_PER_LAYER, LANES)

    # ---- static middle part of the const slab ----
    row = np.arange(BL)
    bprev = (row % L != 0).astype(np.float32)[:, None]           # (BL, 1)
    bnext = (row % L != L - 1).astype(np.float32)[:, None]
    d_idx = np.arange(DK)[None, :]
    h_idx = np.repeat(np.arange(NUM_HEADS), BL)[:, None]
    hmask = ((d_idx >= h_idx * DKH) & (d_idx < (h_idx + 1) * DKH)).astype(np.float32)

    mid = jnp.concatenate(
        [_pad_lanes(jnp.tile(p['timing'], (B, 1))),              # (BL, H)
         _pad_lanes(p['wemb']),                                  # (E, H)
         _pad_lanes(bprev), _pad_lanes(bnext),
         _pad_lanes(jnp.pad(p['lnfg'], ((0, 7), (0, 0)))),       # 8-row block
         _pad_lanes(jnp.pad(p['lnfb'], ((0, 7), (0, 0)))),
         _pad_lanes(hmask)],                                     # (NH*BL, DK)
        axis=0)
    assert mid.shape == (R_BIAS - R_TIM, LANES)

    same_batch = jnp.asarray((row // L)[:, None] == (row // L)[None, :])   # (BL, BL)
    return {'layer_slab': layer_slab, 'mid': mid, 'same_batch': same_batch}


@jax.jit
def encoder_forward(inputs, mask_f, packed):
    """inputs: (B, L, E) f32, mask_f: (B, 1, L) f32 (1.0 == padded key position)."""
    x_blk = _pad_lanes(inputs.reshape(BL, E))                    # (BL, 128)
    key_pad = mask_f.reshape(BL) > 0.5                           # True = padded key
    ok = packed['same_batch'] & jnp.logical_not(key_pad)[None, :]
    bias = jnp.where(ok, 0.0, NEG_INF).astype(jnp.float32)       # (BL, BL)
    bias_blk = _pad_lanes(jnp.tile(bias, (NUM_HEADS, 1)))        # (NH*BL, 128)
    c_slab = jnp.concatenate([x_blk, packed['mid'], bias_blk], axis=0)
    assert c_slab.shape == (C_ROWS, LANES)

    out2d = pl.pallas_call(
        encoder_kernel,
        out_shape=jax.ShapeDtypeStruct((BL, H), jnp.float32),
    )(c_slab, packed['layer_slab'])
    return out2d.reshape(B, L, H)


# ---------------- deterministic parameter init ----------------
def init_params(key):
    ks = jax.random.split(key, 9)

    def nrm(k, shape, scale=0.05):
        return jax.random.normal(k, shape, dtype=jnp.float32) * scale

    p = {}
    p['timing'] = jnp.asarray(_gen_timing_signal(MAX_LEN, H)[0, :L, :])    # (L, H)
    p['wemb'] = nrm(ks[0], (E, H))                                          # Linear.weight.T
    p['ln1g'] = jnp.ones((NUM_LAYERS, H), jnp.float32)
    p['ln1b'] = jnp.zeros((NUM_LAYERS, H), jnp.float32)
    p['wq'] = nrm(ks[1], (NUM_LAYERS, H, DK))
    p['wk'] = nrm(ks[2], (NUM_LAYERS, H, DK))
    p['wv'] = nrm(ks[3], (NUM_LAYERS, H, DV))
    p['wo'] = nrm(ks[4], (NUM_LAYERS, DV, H))
    p['ln2g'] = jnp.ones((NUM_LAYERS, H), jnp.float32)
    p['ln2b'] = jnp.zeros((NUM_LAYERS, H), jnp.float32)
    p['wc1'] = nrm(ks[5], (NUM_LAYERS, 3, H, FILTER))   # Conv1d weight (F,H,3) -> (3,H,F)
    p['bc1'] = nrm(ks[6], (NUM_LAYERS, FILTER))
    p['wc2'] = nrm(ks[7], (NUM_LAYERS, 3, FILTER, H))
    p['bc2'] = nrm(ks[8], (NUM_LAYERS, H))
    p['lnfg'] = jnp.ones((1, H), jnp.float32)
    p['lnfb'] = jnp.zeros((1, H), jnp.float32)
    return p
    # TODO(synk): universal=True / ACT branch of Encoder.forward not implemented.


# ---------------- pure-JAX reference (for correctness check) ----------------
def encoder_reference(inputs, mask_f, p):
    hp = jax.lax.Precision.HIGHEST
    mask_bool = mask_f > 0.5                                   # (B,1,L) True=pad

    def ln(x, g, b):
        mean = x.mean(-1, keepdims=True)
        d = x - mean
        std = jnp.sqrt((d * d).sum(-1, keepdims=True) / (x.shape[-1] - 1))
        return g * d / (std + EPS) + b

    def conv3(xb, w3, bias):
        xp = jnp.pad(xb, ((0, 0), (1, 1), (0, 0)))
        y = sum(jnp.einsum('blc,cf->blf', xp[:, i:i + L], w3[i], precision=hp)
                for i in range(3))
        return y + bias

    x = jnp.einsum('ble,eh->blh', inputs, p['wemb'], precision=hp)
    x = x + p['timing'][None]
    for l in range(NUM_LAYERS):
        xn = ln(x, p['ln1g'][l], p['ln1b'][l])
        q = jnp.einsum('blh,hd->bld', xn, p['wq'][l], precision=hp) * QSCALE
        k = jnp.einsum('blh,hd->bld', xn, p['wk'][l], precision=hp)
        v = jnp.einsum('blh,hd->bld', xn, p['wv'][l], precision=hp)
        qh = q.reshape(B, L, NUM_HEADS, DKH).transpose(0, 2, 1, 3)
        kh = k.reshape(B, L, NUM_HEADS, DKH).transpose(0, 2, 1, 3)
        vh = v.reshape(B, L, NUM_HEADS, DVH).transpose(0, 2, 1, 3)
        logits = jnp.einsum('bhqd,bhkd->bhqk', qh, kh, precision=hp)
        logits = jnp.where(mask_bool[:, None, :, :], NEG_INF, logits)
        w = jax.nn.softmax(logits, axis=-1)
        ctx = jnp.einsum('bhqk,bhkd->bhqd', w, vh, precision=hp)
        ctx = ctx.transpose(0, 2, 1, 3).reshape(B, L, DV)
        x = x + jnp.einsum('bld,dh->blh', ctx, p['wo'][l], precision=hp)
        xn = ln(x, p['ln2g'][l], p['ln2b'][l])
        h1 = jax.nn.relu(conv3(xn, p['wc1'][l], p['bc1'][l]))
        h2 = jax.nn.relu(conv3(h1, p['wc2'][l], p['bc2'][l]))
        x = x + h2
    return ln(x, p['lnfg'][0], p['lnfb'][0])


if __name__ == "__main__":
    key = jax.random.PRNGKey(0)
    kp, kx = jax.random.split(key)
    params = init_params(kp)
    packed = pack_params(params)          # one-time weight/constant packing
    inputs = jax.random.normal(kx, (B, L, E), dtype=jnp.float32)

    # mask: True (1.0) where the key position is padding (e.g. seq lengths 8 and 6)
    lengths = jnp.array([L, L - 2])
    pos = jnp.arange(L)[None, :]
    mask_f = (pos >= lengths[:, None]).astype(jnp.float32)[:, None, :]   # (B,1,L)

    out = encoder_forward(inputs, mask_f, packed)
    out = jax.block_until_ready(out)

    ref = encoder_reference(inputs, mask_f, params)
    assert out.shape == (B, L, H)
    assert bool(jnp.all(jnp.isfinite(out)))
    err = float(jnp.max(jnp.abs(out - ref)))
    if err > 5e-2:
        raise SystemExit(f"mismatch vs reference: max abs err {err}")
    print("KERNEL_OK")
</pallas_src>

<mosaic_0001>
module attributes {stable_mosaic.version = 11 : i64} {
  func.func @encoder_kernel(%arg0: memref<224x128xf32, #tpu.memory_space<vmem>>, %arg1: memref<720x128xf32, #tpu.memory_space<vmem>>, %arg2: memref<16x32xf32, #tpu.memory_space<vmem>>) attributes {dimension_semantics = [], scalar_prefetch = 0 : i64, scratch_operands = 0 : i64, tpu.core_type = #tpu.core_type<tc>} {
    %c0 = arith.constant 0 : index
    %c0_0 = arith.constant 0 : index
    %0 = vector.load %arg0[%c0, %c0_0] : memref<224x128xf32, #tpu.memory_space<vmem>>, vector<16x16xf32>
    %c16 = arith.constant 16 : index
    %c0_1 = arith.constant 0 : index
    %1 = vector.load %arg0[%c16, %c0_1] : memref<224x128xf32, #tpu.memory_space<vmem>>, vector<16x32xf32>
    %c32 = arith.constant 32 : index
    %c0_2 = arith.constant 0 : index
    %2 = vector.load %arg0[%c32, %c0_2] : memref<224x128xf32, #tpu.memory_space<vmem>>, vector<16x32xf32>
    %c48 = arith.constant 48 : index
    %c0_3 = arith.constant 0 : index
    %3 = vector.load %arg0[%c48, %c0_3] : memref<224x128xf32, #tpu.memory_space<vmem>>, vector<16x1xf32>
    %c64 = arith.constant 64 : index
    %c0_4 = arith.constant 0 : index
    %4 = vector.load %arg0[%c64, %c0_4] : memref<224x128xf32, #tpu.memory_space<vmem>>, vector<16x1xf32>
    %c80 = arith.constant 80 : index
    %c0_5 = arith.constant 0 : index
    %5 = vector.load %arg0[%c80, %c0_5] : memref<224x128xf32, #tpu.memory_space<vmem>>, vector<1x32xf32>
    %c88 = arith.constant 88 : index
    %c0_6 = arith.constant 0 : index
    %6 = vector.load %arg0[%c88, %c0_6] : memref<224x128xf32, #tpu.memory_space<vmem>>, vector<1x32xf32>
    %c96 = arith.constant 96 : index
    %c0_7 = arith.constant 0 : index
    %7 = vector.load %arg0[%c96, %c0_7] : memref<224x128xf32, #tpu.memory_space<vmem>>, vector<64x32xf32>
    %c160 = arith.constant 160 : index
    %c0_8 = arith.constant 0 : index
    %8 = vector.load %arg0[%c160, %c0_8] : memref<224x128xf32, #tpu.memory_space<vmem>>, vector<64x16xf32>
    %cst = arith.constant dense<0.000000e+00> : vector<16x32xf32>
    %9 = tpu.matmul %0, %2, %cst {dimension_numbers = #tpu.dot_dimension_numbers<[1], [0], [0], [1], [0, 0, 1, 1], [], []>} : vector<16x16xf32>, vector<16x32xf32>, vector<16x32xf32> -> vector<16x32xf32>
    %10 = arith.addf %9, %1 : vector<16x32xf32>
    %c0_9 = arith.constant 0 : index
    %c0_10 = arith.constant 0 : index
    %11 = vector.load %arg1[%c0_9, %c0_10] : memref<720x128xf32, #tpu.memory_space<vmem>>, vector<8x128xf32>
    %12 = vector.extract_strided_slice %11 {offsets = [0, 0], sizes = [1, 32], strides = [1, 1]} : vector<8x128xf32> to vector<1x32xf32>
    %13 = vector.extract_strided_slice %11 {offsets = [1, 0], sizes = [1, 32], strides = [1, 1]} : vector<8x128xf32> to vector<1x32xf32>
    %14 = vector.extract_strided_slice %11 {offsets = [2, 0], sizes = [1, 32], strides = [1, 1]} : vector<8x128xf32> to vector<1x32xf32>
    %15 = vector.extract_strided_slice %11 {offsets = [3, 0], sizes = [1, 32], strides = [1, 1]} : vector<8x128xf32> to vector<1x32xf32>
    %16 = vector.extract_strided_slice %11 {offsets = [4, 0], sizes = [1, 64], strides = [1, 1]} : vector<8x128xf32> to vector<1x64xf32>
    %17 = vector.extract_strided_slice %11 {offsets = [5, 0], sizes = [1, 32], strides = [1, 1]} : vector<8x128xf32> to vector<1x32xf32>
    %c8 = arith.constant 8 : index
    %c0_11 = arith.constant 0 : index
    %18 = vector.load %arg1[%c8, %c0_11] : memref<720x128xf32, #tpu.memory_space<vmem>>, vector<32x96xf32>
    %c40 = arith.constant 40 : index
    %c0_12 = arith.constant 0 : index
    %19 = vector.load %arg1[%c40, %c0_12] : memref<720x128xf32, #tpu.memory_space<vmem>>, vector<32x32xf32>
    %c72 = arith.constant 72 : index
    %c0_13 = arith.constant 0 : index
    %20 = vector.load %arg1[%c72, %c0_13] : memref<720x128xf32, #tpu.memory_space<vmem>>, vector<96x64xf32>
    %c168 = arith.constant 168 : index
    %c0_14 = arith.constant 0 : index
    %21 = vector.load %arg1[%c168, %c0_14] : memref<720x128xf32, #tpu.memory_space<vmem>>, vector<192x32xf32>
    %cst_15 = arith.constant dense<0.000000e+00> : vector<16xf32>
    %22 = vector.multi_reduction <add>, %10, %cst_15 [1] : vector<16x32xf32> to vector<16xf32>
    %23 = vector.shape_cast %22 : vector<16xf32> to vector<16x1xf32>
    %cst_16 = arith.constant 3.200000e+01 : f32
    %24 = vector.broadcast %cst_16 : f32 to vector<16x1xf32>
    %25 = arith.divf %23, %24 : vector<16x1xf32>
    %26 = vector.broadcast %25 : vector<16x1xf32> to vector<16x32xf32>
    %27 = arith.subf %10, %26 : vector<16x32xf32>
    %28 = arith.mulf %27, %27 : vector<16x32xf32>
    %cst_17 = arith.constant dense<0.000000e+00> : vector<16xf32>
    %29 = vector.multi_reduction <add>, %28, %cst_17 [1] : vector<16x32xf32> to vector<16xf32>
    %30 = vector.shape_cast %29 : vector<16xf32> to vector<16x1xf32>
    %cst_18 = arith.constant 0.0322580636 : f32
    %31 = vector.broadcast %cst_18 : f32 to vector<16x1xf32>
    %32 = arith.mulf %30, %31 : vector<16x1xf32>
    %33 = math.sqrt %32 : vector<16x1xf32>
    %cst_19 = arith.constant 9.99999997E-7 : f32
    %34 = vector.broadcast %cst_19 : f32 to vector<16x1xf32>
    %35 = arith.addf %33, %34 : vector<16x1xf32>
    %36 = vector.broadcast %35 : vector<16x1xf32> to vector<16x32xf32>
    %37 = arith.divf %27, %36 : vector<16x32xf32>
    %38 = vector.broadcast %12 : vector<1x32xf32> to vector<16x32xf32>
    %39 = arith.mulf %38, %37 : vector<16x32xf32>
    %40 = vector.broadcast %13 : vector<1x32xf32> to vector<16x32xf32>
    %41 = arith.addf %39, %40 : vector<16x32xf32>
    %cst_20 = arith.constant dense<0.000000e+00> : vector<16x96xf32>
    %42 = tpu.matmul %41, %18, %cst_20 {dimension_numbers = #tpu.dot_dimension_numbers<[1], [0], [0], [1], [0, 0, 1, 1], [], []>} : vector<16x32xf32>, vector<32x96xf32>, vector<16x96xf32> -> vector<16x96xf32>
    %43 = vector.extract_strided_slice %42 {offsets = [0, 0], sizes = [16, 32], strides = [1, 1]} : vector<16x96xf32> to vector<16x32xf32>
    %44 = vector.extract_strided_slice %42 {offsets = [0, 32], sizes = [16, 32], strides = [1, 1]} : vector<16x96xf32> to vector<16x32xf32>
    %45 = vector.extract_strided_slice %42 {offsets = [0, 64], sizes = [16, 32], strides = [1, 1]} : vector<16x96xf32> to vector<16x32xf32>
    %46 = tpu.concatenate %43, %43, %43, %43 in 0 : vector<16x32xf32>, vector<16x32xf32>, vector<16x32xf32>, vector<16x32xf32> -> vector<64x32xf32>
    %47 = arith.mulf %46, %7 : vector<64x32xf32>
    %cst_21 = arith.constant dense<0.000000e+00> : vector<64x16xf32>
    %48 = tpu.matmul %47, %44, %cst_21 {dimension_numbers = #tpu.dot_dimension_numbers<[1], [1], [0], [0], [0, 0, 1, 0], [], []>} : vector<64x32xf32>, vector<16x32xf32>, vector<64x16xf32> -> vector<64x16xf32>
    %49 = arith.addf %48, %8 : vector<64x16xf32>
    %cst_22 = arith.constant dense<0xFF800000> : vector<64xf32>
    %50 = vector.multi_reduction <maximumf>, %49, %cst_22 [1] : vector<64x16xf32> to vector<64xf32>
    %51 = vector.shape_cast %50 : vector<64xf32> to vector<64x1xf32>
    %52 = vector.broadcast %51 : vector<64x1xf32> to vector<64x16xf32>
    %53 = arith.subf %49, %52 : vector<64x16xf32>
    %54 = math.exp %53 : vector<64x16xf32>
    %cst_23 = arith.constant dense<0.000000e+00> : vector<64xf32>
    %55 = vector.multi_reduction <add>, %54, %cst_23 [1] : vector<64x16xf32> to vector<64xf32>
    %56 = vector.shape_cast %55 : vector<64xf32> to vector<64x1xf32>
    %57 = tpu.reciprocal %56 {approx = true} : vector<64x1xf32> -> vector<64x1xf32>
    %58 = vector.broadcast %57 : vector<64x1xf32> to vector<64x16xf32>
    %59 = arith.mulf %54, %58 : vector<64x16xf32>
    %cst_24 = arith.constant dense<0.000000e+00> : vector<64x32xf32>
    %60 = tpu.matmul %59, %45, %cst_24 {dimension_numbers = #tpu.dot_dimension_numbers<[1], [0], [0], [1], [0, 0, 1, 1], [], []>} : vector<64x16xf32>, vector<16x32xf32>, vector<64x32xf32> -> vector<64x32xf32>
    %61 = arith.mulf %60, %7 : vector<64x32xf32>
    %62 = vector.extract_strided_slice %61 {offsets = [0, 0], sizes = [16, 32], strides = [1, 1]} : vector<64x32xf32> to vector<16x32xf32>
    %63 = vector.extract_strided_slice %61 {offsets = [16, 0], sizes = [16, 32], strides = [1, 1]} : vector<64x32xf32> to vector<16x32xf32>
    %64 = arith.addf %62, %63 : vector<16x32xf32>
    %65 = vector.extract_strided_slice %61 {offsets = [32, 0], sizes = [16, 32], strides = [1, 1]} : vector<64x32xf32> to vector<16x32xf32>
    %66 = arith.addf %64, %65 : vector<16x32xf32>
    %67 = vector.extract_strided_slice %61 {offsets = [48, 0], sizes = [16, 32], strides = [1, 1]} : vector<64x32xf32> to vector<16x32xf32>
    %68 = arith.addf %66, %67 : vector<16x32xf32>
    %cst_25 = arith.constant dense<0.000000e+00> : vector<16x32xf32>
    %69 = tpu.matmul %68, %19, %cst_25 {dimension_numbers = #tpu.dot_dimension_numbers<[1], [0], [0], [1], [0, 0, 1, 1], [], []>} : vector<16x32xf32>, vector<32x32xf32>, vector<16x32xf32> -> vector<16x32xf32>
    %70 = arith.addf %10, %69 : vector<16x32xf32>
    %cst_26 = arith.constant dense<0.000000e+00> : vector<16xf32>
    %71 = vector.multi_reduction <add>, %70, %cst_26 [1] : vector<16x32xf32> to vector<16xf32>
    %72 = vector.shape_cast %71 : vector<16xf32> to vector<16x1xf32>
    %cst_27 = arith.constant 3.200000e+01 : f32
    %73 = vector.broadcast %cst_27 : f32 to vector<16x1xf32>
    %74 = arith.divf %72, %73 : vector<16x1xf32>
    %75 = vector.broadcast %74 : vector<16x1xf32> to vector<16x32xf32>
    %76 = arith.subf %70, %75 : vector<16x32xf32>
    %77 = arith.mulf %76, %76 : vector<16x32xf32>
    %cst_28 = arith.constant dense<0.000000e+00> : vector<16xf32>
    %78 = vector.multi_reduction <add>, %77, %cst_28 [1] : vector<16x32xf32> to vector<16xf32>
    %79 = vector.shape_cast %78 : vector<16xf32> to vector<16x1xf32>
    %cst_29 = arith.constant 0.0322580636 : f32
    %80 = vector.broadcast %cst_29 : f32 to vector<16x1xf32>
    %81 = arith.mulf %79, %80 : vector<16x1xf32>
    %82 = math.sqrt %81 : vector<16x1xf32>
    %cst_30 = arith.constant 9.99999997E-7 : f32
    %83 = vector.broadcast %cst_30 : f32 to vector<16x1xf32>
    %84 = arith.addf %82, %83 : vector<16x1xf32>
    %85 = vector.broadcast %84 : vector<16x1xf32> to vector<16x32xf32>
    %86 = arith.divf %76, %85 : vector<16x32xf32>
    %87 = vector.broadcast %14 : vector<1x32xf32> to vector<16x32xf32>
    %88 = arith.mulf %87, %86 : vector<16x32xf32>
    %89 = vector.broadcast %15 : vector<1x32xf32> to vector<16x32xf32>
    %90 = arith.addf %88, %89 : vector<16x32xf32>
    %c1_i32 = arith.constant 1 : i32
    %91 = tpu.dynamic_rotate %90 by %c1_i32 dim 0 : vector<16x32xf32>, i32 -> vector<16x32xf32>
    %92 = vector.broadcast %3 : vector<16x1xf32> to vector<16x32xf32>
    %93 = arith.mulf %91, %92 : vector<16x32xf32>
    %c15_i32 = arith.constant 15 : i32
    %94 = tpu.dynamic_rotate %90 by %c15_i32 dim 0 : vector<16x32xf32>, i32 -> vector<16x32xf32>
    %95 = vector.broadcast %4 : vector<16x1xf32> to vector<16x32xf32>
    %96 = arith.mulf %94, %95 : vector<16x32xf32>
    %97 = tpu.concatenate %93, %90, %96 in 1 : vector<16x32xf32>, vector<16x32xf32>, vector<16x32xf32> -> vector<16x96xf32>
    %cst_31 = arith.constant dense<0.000000e+00> : vector<16x64xf32>
    %98 = tpu.matmul %97, %20, %cst_31 {dimension_numbers = #tpu.dot_dimension_numbers<[1], [0], [0], [1], [0, 0, 1, 1], [], []>} : vector<16x96xf32>, vector<96x64xf32>, vector<16x64xf32> -> vector<16x64xf32>
    %99 = vector.broadcast %16 : vector<1x64xf32> to vector<16x64xf32>
    %100 = arith.addf %98, %99 : vector<16x64xf32>
    %cst_32 = arith.constant 0.000000e+00 : f32
    %101 = vector.broadcast %cst_32 : f32 to vector<16x64xf32>
    %102 = arith.maximumf %100, %101 : vector<16x64xf32>
    %c1_i32_33 = arith.constant 1 : i32
    %103 = tpu.dynamic_rotate %102 by %c1_i32_33 dim 0 : vector<16x64xf32>, i32 -> vector<16x64xf32>
    %104 = vector.broadcast %3 : vector<16x1xf32> to vector<16x64xf32>
    %105 = arith.mulf %103, %104 : vector<16x64xf32>
    %c15_i32_34 = arith.constant 15 : i32
    %106 = tpu.dynamic_rotate %102 by %c15_i32_34 dim 0 : vector<16x64xf32>, i32 -> vector<16x64xf32>
    %107 = vector.broadcast %4 : vector<16x1xf32> to vector<16x64xf32>
    %108 = arith.mulf %106, %107 : vector<16x64xf32>
    %109 = tpu.concatenate %105, %102, %108 in 1 : vector<16x64xf32>, vector<16x64xf32>, vector<16x64xf32> -> vector<16x192xf32>
    %cst_35 = arith.constant dense<0.000000e+00> : vector<16x32xf32>
    %110 = tpu.matmul %109, %21, %cst_35 {dimension_numbers = #tpu.dot_dimension_numbers<[1], [0], [0], [1], [0, 0, 1, 1], [], []>} : vector<16x192xf32>, vector<192x32xf32>, vector<16x32xf32> -> vector<16x32xf32>
    %111 = vector.broadcast %17 : vector<1x32xf32> to vector<16x32xf32>
    %112 = arith.addf %110, %111 : vector<16x32xf32>
    %cst_36 = arith.constant 0.000000e+00 : f32
    %113 = vector.broadcast %cst_36 : f32 to vector<16x32xf32>
    %114 = arith.maximumf %112, %113 : vector<16x32xf32>
    %115 = arith.addf %70, %114 : vector<16x32xf32>
    %c360 = arith.constant 360 : index
    %c0_37 = arith.constant 0 : index
    %116 = vector.load %arg1[%c360, %c0_37] : memref<720x128xf32, #tpu.memory_space<vmem>>, vector<8x128xf32>
    %117 = vector.extract_strided_slice %116 {offsets = [0, 0], sizes = [1, 32], strides = [1, 1]} : vector<8x128xf32> to vector<1x32xf32>
    %118 = vector.extract_strided_slice %116 {offsets = [1, 0], sizes = [1, 32], strides = [1, 1]} : vector<8x128xf32> to vector<1x32xf32>
    %119 = vector.extract_strided_slice %116 {offsets = [2, 0], sizes = [1, 32], strides = [1, 1]} : vector<8x128xf32> to vector<1x32xf32>
    %120 = vector.extract_strided_slice %116 {offsets = [3, 0], sizes = [1, 32], strides = [1, 1]} : vector<8x128xf32> to vector<1x32xf32>
    %121 = vector.extract_strided_slice %116 {offsets = [4, 0], sizes = [1, 64], strides = [1, 1]} : vector<8x128xf32> to vector<1x64xf32>
    %122 = vector.extract_strided_slice %116 {offsets = [5, 0], sizes = [1, 32], strides = [1, 1]} : vector<8x128xf32> to vector<1x32xf32>
    %c368 = arith.constant 368 : index
    %c0_38 = arith.constant 0 : index
    %123 = vector.load %arg1[%c368, %c0_38] : memref<720x128xf32, #tpu.memory_space<vmem>>, vector<32x96xf32>
    %c400 = arith.constant 400 : index
    %c0_39 = arith.constant 0 : index
    %124 = vector.load %arg1[%c400, %c0_39] : memref<720x128xf32, #tpu.memory_space<vmem>>, vector<32x32xf32>
    %c432 = arith.constant 432 : index
    %c0_40 = arith.constant 0 : index
    %125 = vector.load %arg1[%c432, %c0_40] : memref<720x128xf32, #tpu.memory_space<vmem>>, vector<96x64xf32>
    %c528 = arith.constant 528 : index
    %c0_41 = arith.constant 0 : index
    %126 = vector.load %arg1[%c528, %c0_41] : memref<720x128xf32, #tpu.memory_space<vmem>>, vector<192x32xf32>
    %cst_42 = arith.constant dense<0.000000e+00> : vector<16xf32>
    %127 = vector.multi_reduction <add>, %115, %cst_42 [1] : vector<16x32xf32> to vector<16xf32>
    %128 = vector.shape_cast %127 : vector<16xf32> to vector<16x1xf32>
    %cst_43 = arith.constant 3.200000e+01 : f32
    %129 = vector.broadcast %cst_43 : f32 to vector<16x1xf32>
    %130 = arith.divf %128, %129 : vector<16x1xf32>
    %131 = vector.broadcast %130 : vector<16x1xf32> to vector<16x32xf32>
    %132 = arith.subf %115, %131 : vector<16x32xf32>
    %133 = arith.mulf %132, %132 : vector<16x32xf32>
    %cst_44 = arith.constant dense<0.000000e+00> : vector<16xf32>
    %134 = vector.multi_reduction <add>, %133, %cst_44 [1] : vector<16x32xf32> to vector<16xf32>
    %135 = vector.shape_cast %134 : vector<16xf32> to vector<16x1xf32>
    %cst_45 = arith.constant 0.0322580636 : f32
    %136 = vector.broadcast %cst_45 : f32 to vector<16x1xf32>
    %137 = arith.mulf %135, %136 : vector<16x1xf32>
    %138 = math.sqrt %137 : vector<16x1xf32>
    %cst_46 = arith.constant 9.99999997E-7 : f32
    %139 = vector.broadcast %cst_46 : f32 to vector<16x1xf32>
    %140 = arith.addf %138, %139 : vector<16x1xf32>
    %141 = vector.broadcast %140 : vector<16x1xf32> to vector<16x32xf32>
    %142 = arith.divf %132, %141 : vector<16x32xf32>
    %143 = vector.broadcast %117 : vector<1x32xf32> to vector<16x32xf32>
    %144 = arith.mulf %143, %142 : vector<16x32xf32>
    %145 = vector.broadcast %118 : vector<1x32xf32> to vector<16x32xf32>
    %146 = arith.addf %144, %145 : vector<16x32xf32>
    %cst_47 = arith.constant dense<0.000000e+00> : vector<16x96xf32>
    %147 = tpu.matmul %146, %123, %cst_47 {dimension_numbers = #tpu.dot_dimension_numbers<[1], [0], [0], [1], [0, 0, 1, 1], [], []>} : vector<16x32xf32>, vector<32x96xf32>, vector<16x96xf32> -> vector<16x96xf32>
    %148 = vector.extract_strided_slice %147 {offsets = [0, 0], sizes = [16, 32], strides = [1, 1]} : vector<16x96xf32> to vector<16x32xf32>
    %149 = vector.extract_strided_slice %147 {offsets = [0, 32], sizes = [16, 32], strides = [1, 1]} : vector<16x96xf32> to vector<16x32xf32>
    %150 = vector.extract_strided_slice %147 {offsets = [0, 64], sizes = [16, 32], strides = [1, 1]} : vector<16x96xf32> to vector<16x32xf32>
    %151 = tpu.concatenate %148, %148, %148, %148 in 0 : vector<16x32xf32>, vector<16x32xf32>, vector<16x32xf32>, vector<16x32xf32> -> vector<64x32xf32>
    %152 = arith.mulf %151, %7 : vector<64x32xf32>
    %cst_48 = arith.constant dense<0.000000e+00> : vector<64x16xf32>
    %153 = tpu.matmul %152, %149, %cst_48 {dimension_numbers = #tpu.dot_dimension_numbers<[1], [1], [0], [0], [0, 0, 1, 0], [], []>} : vector<64x32xf32>, vector<16x32xf32>, vector<64x16xf32> -> vector<64x16xf32>
    %154 = arith.addf %153, %8 : vector<64x16xf32>
    %cst_49 = arith.constant dense<0xFF800000> : vector<64xf32>
    %155 = vector.multi_reduction <maximumf>, %154, %cst_49 [1] : vector<64x16xf32> to vector<64xf32>
    %156 = vector.shape_cast %155 : vector<64xf32> to vector<64x1xf32>
    %157 = vector.broadcast %156 : vector<64x1xf32> to vector<64x16xf32>
    %158 = arith.subf %154, %157 : vector<64x16xf32>
    %159 = math.exp %158 : vector<64x16xf32>
    %cst_50 = arith.constant dense<0.000000e+00> : vector<64xf32>
    %160 = vector.multi_reduction <add>, %159, %cst_50 [1] : vector<64x16xf32> to vector<64xf32>
    %161 = vector.shape_cast %160 : vector<64xf32> to vector<64x1xf32>
    %162 = tpu.reciprocal %161 {approx = true} : vector<64x1xf32> -> vector<64x1xf32>
    %163 = vector.broadcast %162 : vector<64x1xf32> to vector<64x16xf32>
    %164 = arith.mulf %159, %163 : vector<64x16xf32>
    %cst_51 = arith.constant dense<0.000000e+00> : vector<64x32xf32>
    %165 = tpu.matmul %164, %150, %cst_51 {dimension_numbers = #tpu.dot_dimension_numbers<[1], [0], [0], [1], [0, 0, 1, 1], [], []>} : vector<64x16xf32>, vector<16x32xf32>, vector<64x32xf32> -> vector<64x32xf32>
    %166 = arith.mulf %165, %7 : vector<64x32xf32>
    %167 = vector.extract_strided_slice %166 {offsets = [0, 0], sizes = [16, 32], strides = [1, 1]} : vector<64x32xf32> to vector<16x32xf32>
    %168 = vector.extract_strided_slice %166 {offsets = [16, 0], sizes = [16, 32], strides = [1, 1]} : vector<64x32xf32> to vector<16x32xf32>
    %169 = arith.addf %167, %168 : vector<16x32xf32>
    %170 = vector.extract_strided_slice %166 {offsets = [32, 0], sizes = [16, 32], strides = [1, 1]} : vector<64x32xf32> to vector<16x32xf32>
    %171 = arith.addf %169, %170 : vector<16x32xf32>
    %172 = vector.extract_strided_slice %166 {offsets = [48, 0], sizes = [16, 32], strides = [1, 1]} : vector<64x32xf32> to vector<16x32xf32>
    %173 = arith.addf %171, %172 : vector<16x32xf32>
    %cst_52 = arith.constant dense<0.000000e+00> : vector<16x32xf32>
    %174 = tpu.matmul %173, %124, %cst_52 {dimension_numbers = #tpu.dot_dimension_numbers<[1], [0], [0], [1], [0, 0, 1, 1], [], []>} : vector<16x32xf32>, vector<32x32xf32>, vector<16x32xf32> -> vector<16x32xf32>
    %175 = arith.addf %115, %174 : vector<16x32xf32>
    %cst_53 = arith.constant dense<0.000000e+00> : vector<16xf32>
    %176 = vector.multi_reduction <add>, %175, %cst_53 [1] : vector<16x32xf32> to vector<16xf32>
    %177 = vector.shape_cast %176 : vector<16xf32> to vector<16x1xf32>
    %cst_54 = arith.constant 3.200000e+01 : f32
    %178 = vector.broadcast %cst_54 : f32 to vector<16x1xf32>
    %179 = arith.divf %177, %178 : vector<16x1xf32>
    %180 = vector.broadcast %179 : vector<16x1xf32> to vector<16x32xf32>
    %181 = arith.subf %175, %180 : vector<16x32xf32>
    %182 = arith.mulf %181, %181 : vector<16x32xf32>
    %cst_55 = arith.constant dense<0.000000e+00> : vector<16xf32>
    %183 = vector.multi_reduction <add>, %182, %cst_55 [1] : vector<16x32xf32> to vector<16xf32>
    %184 = vector.shape_cast %183 : vector<16xf32> to vector<16x1xf32>
    %cst_56 = arith.constant 0.0322580636 : f32
    %185 = vector.broadcast %cst_56 : f32 to vector<16x1xf32>
    %186 = arith.mulf %184, %185 : vector<16x1xf32>
    %187 = math.sqrt %186 : vector<16x1xf32>
    %cst_57 = arith.constant 9.99999997E-7 : f32
    %188 = vector.broadcast %cst_57 : f32 to vector<16x1xf32>
    %189 = arith.addf %187, %188 : vector<16x1xf32>
    %190 = vector.broadcast %189 : vector<16x1xf32> to vector<16x32xf32>
    %191 = arith.divf %181, %190 : vector<16x32xf32>
    %192 = vector.broadcast %119 : vector<1x32xf32> to vector<16x32xf32>
    %193 = arith.mulf %192, %191 : vector<16x32xf32>
    %194 = vector.broadcast %120 : vector<1x32xf32> to vector<16x32xf32>
    %195 = arith.addf %193, %194 : vector<16x32xf32>
    %c1_i32_58 = arith.constant 1 : i32
    %196 = tpu.dynamic_rotate %195 by %c1_i32_58 dim 0 : vector<16x32xf32>, i32 -> vector<16x32xf32>
    %197 = vector.broadcast %3 : vector<16x1xf32> to vector<16x32xf32>
    %198 = arith.mulf %196, %197 : vector<16x32xf32>
    %c15_i32_59 = arith.constant 15 : i32
    %199 = tpu.dynamic_rotate %195 by %c15_i32_59 dim 0 : vector<16x32xf32>, i32 -> vector<16x32xf32>
    %200 = vector.broadcast %4 : vector<16x1xf32> to vector<16x32xf32>
    %201 = arith.mulf %199, %200 : vector<16x32xf32>
    %202 = tpu.concatenate %198, %195, %201 in 1 : vector<16x32xf32>, vector<16x32xf32>, vector<16x32xf32> -> vector<16x96xf32>
    %cst_60 = arith.constant dense<0.000000e+00> : vector<16x64xf32>
    %203 = tpu.matmul %202, %125, %cst_60 {dimension_numbers = #tpu.dot_dimension_numbers<[1], [0], [0], [1], [0, 0, 1, 1], [], []>} : vector<16x96xf32>, vector<96x64xf32>, vector<16x64xf32> -> vector<16x64xf32>
    %204 = vector.broadcast %121 : vector<1x64xf32> to vector<16x64xf32>
    %205 = arith.addf %203, %204 : vector<16x64xf32>
    %cst_61 = arith.constant 0.000000e+00 : f32
    %206 = vector.broadcast %cst_61 : f32 to vector<16x64xf32>
    %207 = arith.maximumf %205, %206 : vector<16x64xf32>
    %c1_i32_62 = arith.constant 1 : i32
    %208 = tpu.dynamic_rotate %207 by %c1_i32_62 dim 0 : vector<16x64xf32>, i32 -> vector<16x64xf32>
    %209 = vector.broadcast %3 : vector<16x1xf32> to vector<16x64xf32>
    %210 = arith.mulf %208, %209 : vector<16x64xf32>
    %c15_i32_63 = arith.constant 15 : i32
    %211 = tpu.dynamic_rotate %207 by %c15_i32_63 dim 0 : vector<16x64xf32>, i32 -> vector<16x64xf32>
    %212 = vector.broadcast %4 : vector<16x1xf32> to vector<16x64xf32>
    %213 = arith.mulf %211, %212 : vector<16x64xf32>
    %214 = tpu.concatenate %210, %207, %213 in 1 : vector<16x64xf32>, vector<16x64xf32>, vector<16x64xf32> -> vector<16x192xf32>
    %cst_64 = arith.constant dense<0.000000e+00> : vector<16x32xf32>
    %215 = tpu.matmul %214, %126, %cst_64 {dimension_numbers = #tpu.dot_dimension_numbers<[1], [0], [0], [1], [0, 0, 1, 1], [], []>} : vector<16x192xf32>, vector<192x32xf32>, vector<16x32xf32> -> vector<16x32xf32>
    %216 = vector.broadcast %122 : vector<1x32xf32> to vector<16x32xf32>
    %217 = arith.addf %215, %216 : vector<16x32xf32>
    %cst_65 = arith.constant 0.000000e+00 : f32
    %218 = vector.broadcast %cst_65 : f32 to vector<16x32xf32>
    %219 = arith.maximumf %217, %218 : vector<16x32xf32>
    %220 = arith.addf %175, %219 : vector<16x32xf32>
    %cst_66 = arith.constant dense<0.000000e+00> : vector<16xf32>
    %221 = vector.multi_reduction <add>, %220, %cst_66 [1] : vector<16x32xf32> to vector<16xf32>
    %222 = vector.shape_cast %221 : vector<16xf32> to vector<16x1xf32>
    %cst_67 = arith.constant 3.200000e+01 : f32
    %223 = vector.broadcast %cst_67 : f32 to vector<16x1xf32>
    %224 = arith.divf %222, %223 : vector<16x1xf32>
    %225 = vector.broadcast %224 : vector<16x1xf32> to vector<16x32xf32>
    %226 = arith.subf %220, %225 : vector<16x32xf32>
    %227 = arith.mulf %226, %226 : vector<16x32xf32>
    %cst_68 = arith.constant dense<0.000000e+00> : vector<16xf32>
    %228 = vector.multi_reduction <add>, %227, %cst_68 [1] : vector<16x32xf32> to vector<16xf32>
    %229 = vector.shape_cast %228 : vector<16xf32> to vector<16x1xf32>
    %cst_69 = arith.constant 0.0322580636 : f32
    %230 = vector.broadcast %cst_69 : f32 to vector<16x1xf32>
    %231 = arith.mulf %229, %230 : vector<16x1xf32>
    %232 = math.sqrt %231 : vector<16x1xf32>
    %cst_70 = arith.constant 9.99999997E-7 : f32
    %233 = vector.broadcast %cst_70 : f32 to vector<16x1xf32>
    %234 = arith.addf %232, %233 : vector<16x1xf32>
    %235 = vector.broadcast %234 : vector<16x1xf32> to vector<16x32xf32>
    %236 = arith.divf %226, %235 : vector<16x32xf32>
    %237 = vector.broadcast %5 : vector<1x32xf32> to vector<16x32xf32>
    %238 = arith.mulf %237, %236 : vector<16x32xf32>
    %239 = vector.broadcast %6 : vector<1x32xf32> to vector<16x32xf32>
    %240 = arith.addf %238, %239 : vector<16x32xf32>
    %c0_71 = arith.constant 0 : index
    %c0_72 = arith.constant 0 : index
    %241 = vector.load %arg2[%c0_71, %c0_72] : memref<16x32xf32, #tpu.memory_space<vmem>>, vector<16x32xf32>
    tpu.vector_store %arg2[%c0_71, %c0_72], %240 {strides = array<i32>} : memref<16x32xf32, #tpu.memory_space<vmem>>, vector<16x32xf32>,
    return
  }
}

</mosaic_0001>

<bundles_post_ra>
// kernel: encoder_forward.1
= control target key start
LH: loop header
LB: loop body
LE: loop exit
PB: predicated region body
PF: predicated region fallthrough
CT: control target
= control target key end

     0   :  { %7 = vsyncpa [#allocation3], 0  ;;  %s3207_s0 = inlined_call_operand.vmem [shape: f32[224,128], index: 0, kind: input, shape index: {}]   ;;  %s3208_s1 = inlined_call_operand.hbm [shape: f32[720,128], index: 1, kind: input, shape index: {}]   ;;  %s3209_s2 = inlined_call_operand.hbm [shape: f32[16,32], index: 2, kind: output, shape index: {}]  }
   0x1   :  { %8 = vsyncpa [#allocation4], 0  ;;  %s2585_s9 = smov [#allocation2]  }
   0x2   :  { %s16_s10 = sshll.u32 %s2585_s9, 4  ;;  %s17_s10 = int_to_ptr.vmem [resolvable:$true] %s16_s10 }
   0x3   :  { %s2549_s11 = scalar_lea.vmem %s17_s10, 11520  ;;  %p2554_p1 = scmp.lt.s32.totalorder %s17_s10, %s17_s10 }
   0x4   :  { %p2550_p0 = scmp.ne.s32.totalorder %s17_s10, %s2549_s11  ;;  %p2555_p2 = scmp.lt.s32.totalorder %s2549_s11, %s2549_s11 }
   0x6   :  { %p2556_p3 = por %p2555_p2, %p2554_p1 }
   0x8   :  { %p2557_p4 = pnand %p2556_p3, %p2550_p0 }
   0xa   :  { %2560 = shalt.err (!%p2557_p4)
}
   0xb   :  { %s2586_s12 = smov 128   ;;  %s2587_s13 = smov 8  }
   0xc   :  { %22 = dma.hbm_to_vmem [thread:$0]  %s3208_s1, 11520, %s17_s10, [#allocation3], %s2586_s12, %s2586_s12, %s2587_s13  }
   0xd   :  { %2581 = dma.done.wait [#allocation3], 11520  }
   0xe   :  { %2582 = vsyncadd [#allocation3], 4294955776  ;;  %vm54_vm0 = vcmask 130048   ;;  %v31_v0 = vld [vmem:[%s3207_s0 + $0x28] sm:$0xff]  ;;  %v30_v1 = vld [vmem:[%s3207_s0 + $0x20] sm:$0xff]  ;;  %vm181_vm1 = vcmask 261120   ;;  %v223_v40 = vlaneseq }
   0xf   :  { %v26_v2 = vld [vmem:[%s3207_s0] sm:$0xff]  ;;  %2241 = vmatprep.subr.mxu1 %v31_v0  ;;  %v27_v3 = vld [vmem:[%s3207_s0 + $0x8] sm:$0xff]  ;;  %v28_v5 = vld [vmem:[%s3207_s0 + $0x10] sm:$0xff]  ;;  %s2588_s29 = smov 96   ;;  %s2589_s6 = smov 64   ;;  %vm889_vm12 = vcmask 523264  }
  0x10   :  { %2245 = vmatprep.mubr.msk.f32.mxu1 %vm54_vm0, %v26_v2  ;;  %2242 = vmatpush3.msra.mxu1 %v31_v0  ;;  %v29_v6 = vld [vmem:[%s3207_s0 + $0x18] sm:$0xff]  ;;  %v140_v22 = vld [vmem:[#allocation2 + $0x20] sm:$0xff]  ;;  %v138_v24 = vld [vmem:[#allocation2 + $0x10] sm:$0xff]  ;;  %v2647_v43 = vshrl.u32 %v223_v40, 7  ;;  %s2591_s17 = smov 32   ;;  %vm896_vm13 = vcmask 785408  }
  0x11   :  { %2243 = vmatprep.subr.mxu1 %v30_v1  ;;  %v139_v23 = vld [vmem:[#allocation2 + $0x18] sm:$0xff]  ;;  %v137_v25 = vld [vmem:[#allocation2 + $0x8] sm:$0xff]  ;;  %v2650_v45 = vld [vmem:[#allocation2] sm:$0xff]  ;;  %s2593_s25 = smov [#allocation5]  }
  0x12   :  { %2244 = vmatpush3.msra.mxu1 %v30_v1  ;;  %v225_v44 = vsub.s32 0, %v2647_v43  ;;  %v231_v46 = vsub.s32 1, %v2647_v43  ;;  %v2666_v58 = vld [vmem:[%s3207_s0 + $0x60] sm:$0xff]  ;;  %v2683_v63 = vld [vmem:[%s3207_s0 + $0x68] sm:$0xff]  ;;  %v2688_v0 = vld [vmem:[%s3207_s0 + $0x70] sm:$0xff]  ;;  %vm839_vm10 = vcmp.lt.s32.totalorder %v2647_v43, 1 }
  0x13   :  { %2246 = vmatmul.mubr.msk.f32.vlgmr.msra.gmra.mxu1 %vm54_vm0, %v27_v3  ;;  %2248 = vmatprep.subr.mxu1 %v140_v22  ;;  %v2698_v3 = vld [vmem:[%s3207_s0 + $0x78] sm:$0xff]  ;;  %vm856_vm11 = vcmp.lt.s32.totalorder %v2647_v43, 7  ;;  %s2077_s26 = sshll.u32 %s2593_s25, 4  ;;  %s2078_s26 = int_to_ptr.vmem [resolvable:$true] %s2077_s26 }
  0x14   :  { %2249 = vmatpush3.msra.mxu1 %v140_v22  ;;  %v226_v47 = vrot.slane %v2650_v45, %v225_v44  ;;  %v232_v50 = vrot.slane %v2650_v45, %v231_v46  ;;  %s2561_s27 = scalar_lea.vmem %s2078_s26, 256  ;;  %p2566_p6 = scmp.lt.s32.totalorder %s2078_s26, %s2078_s26 }
  0x15   :  { %2250 = vmatprep.subr.mxu1 %v139_v23  ;;  %p2562_p5 = scmp.ne.s32.totalorder %s2078_s26, %s2561_s27  ;;  %p2567_p7 = scmp.lt.s32.totalorder %s2561_s27, %s2561_s27 }
  0x16   :  { %2251 = vmatpush3.msra.mxu1 %v139_v23 }
  0x17   :  { %2252 = vmatprep.subr.mxu1 %v138_v24  ;;  %p2568_p8 = por %p2567_p7, %p2566_p6 }
  0x18   :  { %2253 = vmatpush3.msra.mxu1 %v138_v24  ;;  %v48_v24 = vld [vmem:[%s3207_s0 + $0xb0] sm:$0xff] }
  0x19   :  { %2254 = vmatprep.subr.mxu1 %v137_v25  ;;  %p2569_p9 = pnand %p2568_p8, %p2562_p5 }
  0x1a   :  { %2255 = vmatpush3.msra.mxu1 %v137_v25 }
  0xd3   :  { %v2247_v4 = vpop.f32.mrf.mxu1 }
  0xd4   :  { %v2637_v9 = vadd.f32 %v2247_v4, %v29_v6  ;;  %v2704_v4 = vld [vmem:[%s3207_s0 + $0x80] sm:$0xff] }
  0xd5   :  { %v127_v7 = vpop.f32.mrf.mxu1 }
  0xd6   :  { %v2635_v8 = vadd.f32 %v127_v7, %v28_v5  ;;  %v185_v11 = vsel %vm181_vm1, %v2637_v9, 0.0  ;;  %v2714_v7 = vld [vmem:[%s3207_s0 + $0x88] sm:$0xff] }
  0xd8   :  { %v182_v10 = vsel %vm181_vm1, %v2635_v8, 0.0 }
  0xd9   :  { %183 = vadd.xlane.f32.xlu0 %v182_v10  ;;  %v2720_v10 = vld [vmem:[%s3207_s0 + $0x90] sm:$0xff] }
  0xdd   :  { %186 = vadd.xlane.f32.xlu0 %v185_v11 }
 0x162   :  { %v184_v12 = vpop.xlane.xlu0 %183 }
 0x163   :  { %v189_v13 = vmul.f32 0.03125, %v184_v12 }
 0x165   :  { %v191_v14 = vsub.f32 %v2635_v8, %v189_v13  ;;  %v2730_v13 = vld [vmem:[%s3207_s0 + $0x98] sm:$0xff] }
 0x166   :  { %v187_v15 = vpop.xlane.xlu0 %186 }
 0x167   :  { %v190_v16 = vmul.f32 0.03125, %v187_v15  ;;  %v193_v17 = vmul.f32 %v191_v14, %v191_v14  ;;  %v47_v15 = vld [vmem:[%s3207_s0 + $0xa8] sm:$0xff] }
 0x169   :  { %v192_v18 = vsub.f32 %v2637_v9, %v190_v16  ;;  %v195_v19 = vsel %vm181_vm1, %v193_v17, 0.0  ;;  %v46_v17 = vld [vmem:[%s3207_s0 + $0xa0] sm:$0xff] }
 0x16a   :  { %196 = vadd.xlane.f32.xlu1 %v195_v19 }
 0x16b   :  { %v194_v20 = vmul.f32 %v192_v18, %v192_v18 }
 0x16d   :  { %v198_v21 = vsel %vm181_vm1, %v194_v20, 0.0  ;;  %v49_v20 = vld [vmem:[%s3207_s0 + $0xb8] sm:$0xff] }
 0x16e   :  { %199 = vadd.xlane.f32.xlu1 %v198_v21 }
 0x1f3   :  { %v197_v26 = vpop.xlane.xlu1 %196 }
 0x1f4   :  { %v201_v27 = vmul.f32 0.032258064, %v197_v26 }
 0x1f6   :  { %2421 = vrsqrt.f32 %v201_v27  ;;  %vm205_vm2 = vcmp.eq.f32.partialorder %v201_v27, inf  ;;  %v208_v32 = vand.u32 2147483648, %v201_v27  ;;  %vm207_vm3 = vcmp.eq.f32.partialorder %v201_v27, 0.0 }
 0x1f7   :  { %v200_v28 = vpop.xlane.xlu1 %199 }
 0x1f8   :  { %v202_v29 = vmul.f32 0.032258064, %v200_v28  ;;  %v51_v28 = vld [vmem:[%s3207_s0 + $0xc8] sm:$0xff] }
 0x1fa   :  { %2423 = vrsqrt.f32 %v202_v29  ;;  %vm212_vm4 = vcmp.eq.f32.partialorder %v202_v29, inf  ;;  %v215_v38 = vand.u32 2147483648, %v202_v29  ;;  %vm214_vm5 = vcmp.eq.f32.partialorder %v202_v29, 0.0 }
 0x203   :  { %v2422_v30 = vpop.eup %2421 }
 0x204   :  { %v204_v31 = vmul.f32 %v2422_v30, %v201_v27 }
 0x206   :  { %v206_v33 = vsel %vm205_vm2, %v201_v27, %v204_v31  ;;  %v50_v31 = vld [vmem:[%s3207_s0 + $0xc0] sm:$0xff] }
 0x207   :  { %v2424_v34 = vpop.eup %2423  ;;  %v209_v35 = vsel %vm207_vm3, %v208_v32, %v206_v33 }
 0x208   :  { %v217_v36 = vadd.f32 1e-06, %v209_v35  ;;  %v211_v37 = vmul.f32 %v2424_v34, %v202_v29 }
 0x20a   :  { %2425 = vrcp.f32 %v217_v36  ;;  %v213_v39 = vsel %vm212_vm4, %v202_v29, %v211_v37  ;;  %v53_v36 = vld [vmem:[%s3207_s0 + $0xd8] sm:$0xff] }
 0x20b   :  { %v216_v41 = vsel %vm214_vm5, %v215_v38, %v213_v39  ;;  %v52_v39 = vld [vmem:[%s3207_s0 + $0xd0] sm:$0xff] }
 0x20c   :  { %v218_v42 = vadd.f32 1e-06, %v216_v41 }
 0x20e   :  { %2427 = vrcp.f32 %v218_v42 }
 0x217   :  { %v2426_v48 = vpop.eup %2425 }
 0x218   :  { %v220_v49 = vmul.f32 %v2426_v48, %v191_v14 }
 0x21a   :  { %v227_v51 = vmul.f32 %v226_v47, %v220_v49 }
 0x21b   :  { %v2428_v52 = vpop.eup %2427 }
 0x21c   :  { %v222_v53 = vmul.f32 %v2428_v52, %v192_v18  ;;  %v233_v54 = vadd.f32 %v232_v50, %v227_v51 }
 0x21e   :  { %v228_v55 = vmul.f32 %v226_v47, %v222_v53  ;;  %2256 = vmatprep.mubr.msk.f32.mxu1 %vm181_vm1, %v233_v54 }
 0x220   :  { %v234_v56 = vadd.f32 %v232_v50, %v228_v55 }
 0x222   :  { %2257 = vmatmul.mubr.msk.f32.vlgmr.msra.gmra.mxu1 %vm181_vm1, %v234_v56 }
 0x2e2   :  { %v2661_v57 = vpop.f32.mrf.mxu1 }
 0x2e3   :  { %328 = vrot.lane.b32.xlu0 %v2661_v57, %s2588_s29  ;;  %v317_v1 = vmul.f32 %v2661_v57, %v2683_v63  ;;  %v319_v5 = vmul.f32 %v2661_v57, %v2698_v3  ;;  %v321_v11 = vmul.f32 %v2661_v57, %v2714_v7  ;;  %v323_v14 = vmul.f32 %v2661_v57, %v2730_v13 }
 0x2e4   :  { %v2670_v59 = vpop.f32.mrf.mxu1 }
 0x2e5   :  { %326 = vrot.lane.b32.xlu1 %v2670_v59, %s2588_s29  ;;  %v316_v60 = vmul.f32 %v2670_v59, %v2666_v58  ;;  %v318_v2 = vmul.f32 %v2670_v59, %v2688_v0  ;;  %v320_v6 = vmul.f32 %v2670_v59, %v2704_v4  ;;  %v322_v12 = vmul.f32 %v2670_v59, %v2720_v10 }
 0x2e7   :  { %2263 = vmatprep.mubr.msk.f32.mxu1 %vm181_vm1, %v316_v60 }
 0x355   :  { %v329_v61 = vpop.permute.xlu0 %328 }
 0x356   :  { %2259 = vmatprep.subr.msk.mxu1 %vm181_vm1, %v329_v61 }
 0x357   :  { %2260 = vmatpush3.xpose.msk.msra.mxu1 %vm181_vm1, %v329_v61  ;;  %v327_v62 = vpop.permute.xlu1 %326 }
 0x358   :  { %2261 = vmatprep.subr.msk.mxu1 %vm181_vm1, %v327_v62 }
 0x35b   :  { %2262 = vmatpush3.xpose.msk.msra.mxu1 %vm181_vm1, %v327_v62 }
 0x35e   :  { %2264 = vmatmul.mubr.msk.f32.vlgmr.msra.gmra.mxu1 %vm181_vm1, %v317_v1 }
 0x35f   :  { %2266 = vmatprep.mubr.msk.f32.mxu1 %vm181_vm1, %v318_v2 }
 0x362   :  { %2267 = vmatmul.mubr.msk.f32.gmra.mxu1 %vm181_vm1, %v319_v5 }
 0x363   :  { %2269 = vmatprep.mubr.msk.f32.mxu1 %vm181_vm1, %v320_v6 }
 0x366   :  { %2270 = vmatmul.mubr.msk.f32.gmra.mxu1 %vm181_vm1, %v321_v11 }
 0x367   :  { %2272 = vmatprep.mubr.msk.f32.mxu1 %vm181_vm1, %v322_v12 }
 0x36a   :  { %2273 = vmatmul.mubr.msk.f32.gmra.mxu1 %vm181_vm1, %v323_v14 }
 0x41e   :  { %v2265_v16 = vpop.f32.mrf.mxu1 }
 0x41f   :  { %v430_v18 = vadd.f32 %v2265_v16, %v47_v15 }
 0x420   :  { %v424_v19 = vpop.f32.mrf.mxu1 }
 0x421   :  { %v425_v21 = vadd.f32 %v424_v19, %v46_v17  ;;  %v466_v22 = vsel %vm54_vm0, %v430_v18, -inf }
 0x422   :  { %467 = vmax.xlane.f32.xlu0 %v466_v22  ;;  %v2268_v23 = vpop.f32.mrf.mxu1 }
 0x423   :  { %v440_v25 = vadd.f32 %v2268_v23, %v49_v20  ;;  %v463_v26 = vsel %vm54_vm0, %v425_v21, -inf }
 0x424   :  { %v434_v27 = vpop.f32.mrf.mxu1  ;;  %464 = vmax.xlane.f32.xlu1 %v463_v26 }
 0x425   :  { %v435_v29 = vadd.f32 %v434_v27, %v48_v24  ;;  %v472_v34 = vsel %vm54_vm0, %v440_v25, -inf }
 0x426   :  { %v2271_v30 = vpop.f32.mrf.mxu1 }
 0x427   :  { %v450_v32 = vadd.f32 %v2271_v30, %v51_v28  ;;  %v469_v33 = vsel %vm54_vm0, %v435_v29, -inf }
 0x428   :  { %v444_v35 = vpop.f32.mrf.mxu1  ;;  %470 = vmax.xlane.f32.xlu0 %v469_v33  ;;  %473 = vmax.xlane.f32.xlu1 %v472_v34 }
 0x429   :  { %v445_v37 = vadd.f32 %v444_v35, %v50_v31  ;;  %v478_v42 = vsel %vm54_vm0, %v450_v32, -inf }
 0x42a   :  { %v2274_v38 = vpop.f32.mrf.mxu1 }
 0x42b   :  { %v460_v40 = vadd.f32 %v2274_v38, %v53_v36  ;;  %v475_v41 = vsel %vm54_vm0, %v445_v37, -inf }
 0x42c   :  { %v454_v47 = vpop.f32.mrf.mxu1  ;;  %476 = vmax.xlane.f32.xlu0 %v475_v41  ;;  %479 = vmax.xlane.f32.xlu1 %v478_v42 }
 0x42d   :  { %v455_v48 = vadd.f32 %v454_v47, %v52_v39  ;;  %v484_v50 = vsel %vm54_vm0, %v460_v40, -inf }
 0x42f   :  { %v481_v49 = vsel %vm54_vm0, %v455_v48, -inf }
 0x430   :  { %482 = vmax.xlane.f32.xlu0 %v481_v49  ;;  %485 = vmax.xlane.f32.xlu1 %v484_v50 }
 0x4ab   :  { %v468_v51 = vpop.xlane.xlu0 %467 }
 0x4ac   :  { %v488_v52 = vsub.f32 %v430_v18, %v468_v51 }
 0x4ad   :  { %v465_v53 = vpop.xlane.xlu1 %464 }
 0x4ae   :  { %v497_v54 = vmul.f32 1.442695, %v488_v52  ;;  %v487_v55 = vsub.f32 %v425_v21, %v465_v53 }
 0x4b0   :  { %2429 = vpow2.f32 %v497_v54  ;;  %v495_v56 = vmul.f32 1.442695, %v487_v55 }
 0x4b1   :  { %v471_v60 = vpop.xlane.xlu0 %470  ;;  %v474_v61 = vpop.xlane.xlu1 %473 }
 0x4b2   :  { %2431 = vpow2.f32 %v495_v56  ;;  %v489_v62 = vsub.f32 %v435_v29, %v471_v60  ;;  %v490_v1 = vsub.f32 %v440_v25, %v474_v61 }
 0x4b4   :  { %v499_v2 = vmul.f32 1.442695, %v489_v62  ;;  %v501_v5 = vmul.f32 1.442695, %v490_v1 }
 0x4b5   :  { %v477_v6 = vpop.xlane.xlu0 %476  ;;  %v480_v11 = vpop.xlane.xlu1 %479 }
 0x4b6   :  { %2433 = vpow2.f32 %v499_v2  ;;  %v491_v12 = vsub.f32 %v445_v37, %v477_v6  ;;  %v492_v14 = vsub.f32 %v450_v32, %v480_v11 }
 0x4b7   :  { %2435 = vpow2.f32 %v501_v5 }
 0x4b8   :  { %v503_v15 = vmul.f32 1.442695, %v491_v12  ;;  %v505_v16 = vmul.f32 1.442695, %v492_v14 }
 0x4b9   :  { %v483_v17 = vpop.xlane.xlu0 %482  ;;  %v486_v18 = vpop.xlane.xlu1 %485 }
 0x4ba   :  { %2437 = vpow2.f32 %v503_v15  ;;  %v493_v19 = vsub.f32 %v455_v48, %v483_v17  ;;  %v494_v20 = vsub.f32 %v460_v40, %v486_v18  ;;  %v144_v15 = vld [vmem:[#allocation2 + $0x40] sm:$0xff]  ;;  %v142_v17 = vld [vmem:[#allocation2 + $0x30] sm:$0xff]  ;;  %v141_v18 = vld [vmem:[#allocation2 + $0x28] sm:$0xff] }
 0x4bb   :  { %2439 = vpow2.f32 %v505_v16  ;;  %2291 = vmatprep.subr.mxu0 %v144_v15  ;;  %v143_v16 = vld [vmem:[#allocation2 + $0x38] sm:$0xff] }
 0x4bc   :  { %v507_v21 = vmul.f32 1.442695, %v493_v19  ;;  %v509_v22 = vmul.f32 1.442695, %v494_v20  ;;  %2292 = vmatpush3.msra.mxu0 %v144_v15 }
 0x4bd   :  { %v2430_v23 = vpop.eup %2429  ;;  %2293 = vmatprep.subr.mxu0 %v143_v16 }
 0x4be   :  { %2441 = vpow2.f32 %v507_v21  ;;  %v514_v24 = vsel %vm54_vm0, %v2430_v23, 0.0  ;;  %2294 = vmatpush3.msra.mxu0 %v143_v16 }
 0x4bf   :  { %v2432_v25 = vpop.eup %2431  ;;  %2443 = vpow2.f32 %v509_v22  ;;  %515 = vadd.xlane.f32.xlu1 %v514_v24  ;;  %2295 = vmatprep.subr.mxu0 %v142_v17 }
 0x4c0   :  { %v511_v26 = vsel %vm54_vm0, %v2432_v25, 0.0  ;;  %2296 = vmatpush3.msra.mxu0 %v142_v17 }
 0x4c1   :  { %512 = vadd.xlane.f32.xlu0 %v511_v26  ;;  %2297 = vmatprep.subr.mxu0 %v141_v18 }
 0x4c2   :  { %2298 = vmatpush3.msra.mxu0 %v141_v18 }
 0x4c3   :  { %v2434_v27 = vpop.eup %2433 }
 0x4c4   :  { %v2436_v28 = vpop.eup %2435  ;;  %v517_v29 = vsel %vm54_vm0, %v2434_v27, 0.0 }
 0x4c5   :  { %518 = vadd.xlane.f32.xlu0 %v517_v29  ;;  %v520_v30 = vsel %vm54_vm0, %v2436_v28, 0.0 }
 0x4c6   :  { %521 = vadd.xlane.f32.xlu1 %v520_v30 }
 0x4c7   :  { %v2438_v31 = vpop.eup %2437 }
 0x4c8   :  { %v2440_v32 = vpop.eup %2439  ;;  %v523_v33 = vsel %vm54_vm0, %v2438_v31, 0.0 }
 0x4c9   :  { %524 = vadd.xlane.f32.xlu0 %v523_v33  ;;  %v526_v34 = vsel %vm54_vm0, %v2440_v32, 0.0 }
 0x4ca   :  { %527 = vadd.xlane.f32.xlu1 %v526_v34 }
 0x4cb   :  { %v2442_v35 = vpop.eup %2441 }
 0x4cc   :  { %v2444_v36 = vpop.eup %2443  ;;  %v529_v37 = vsel %vm54_vm0, %v2442_v35, 0.0 }
 0x4cd   :  { %530 = vadd.xlane.f32.xlu0 %v529_v37  ;;  %v532_v38 = vsel %vm54_vm0, %v2444_v36, 0.0 }
 0x4ce   :  { %533 = vadd.xlane.f32.xlu1 %v532_v38 }
 0x4df   :  { %551 = vrot.lane.b32.xlu1 %v2670_v59, %s2589_s6 }
 0x4e3   :  { %553 = vrot.lane.b32.xlu0 %v2661_v57, %s2589_s6 }
 0x548   :  { %v516_v39 = vpop.xlane.xlu1 %515 }
 0x54a   :  { %v513_v40 = vpop.xlane.xlu0 %512 }
 0x54b   :  { %2445 = vrcp.f32 %v513_v40 }
 0x54c   :  { %2447 = vrcp.f32 %v516_v39  ;;  %v2590_v39 = vmov 0  }
 0x54d   :  { %2420 = vset.pattern.permute.xlu1 %v2590_v39  ;;  %2419 = vset.pattern.permute.xlu0 %v2590_v39 }
 0x54e   :  { %v519_v41 = vpop.xlane.xlu0 %518 }
 0x54f   :  { %2449 = vrcp.f32 %v519_v41  ;;  %v522_v42 = vpop.xlane.xlu1 %521 }
 0x550   :  { %2451 = vrcp.f32 %v522_v42 }
 0x552   :  { %v525_v47 = vpop.xlane.xlu0 %524 }
 0x553   :  { %2453 = vrcp.f32 %v525_v47  ;;  %v528_v48 = vpop.xlane.xlu1 %527 }
 0x554   :  { %2455 = vrcp.f32 %v528_v48 }
 0x556   :  { %v531_v49 = vpop.xlane.xlu0 %530 }
 0x557   :  { %2457 = vrcp.f32 %v531_v49  ;;  %v534_v50 = vpop.xlane.xlu1 %533 }
 0x558   :  { %v2446_v51 = vpop.eup %2445  ;;  %2459 = vrcp.f32 %v534_v50 }
 0x559   :  { %v543_v59 = vmul.f32 %v2446_v51, %v2432_v25  ;;  %v2448_v52 = vpop.eup %2447 }
 0x55a   :  { %v554_v57 = vpop.permute.xlu0 %553  ;;  %v544_v55 = vmul.f32 %v2448_v52, %v2430_v23  ;;  %v32_v52 = vld [vmem:[%s3207_s0 + $0x30] sm:$0xff] }
 0x55b   :  { %2275 = vmatprep.subr.mxu1 %v554_v57  ;;  %2279 = vmatprep.mubr.msk.f32.mxu1 %vm54_vm0, %v543_v59  ;;  %v552_v54 = vpop.permute.xlu1 %551  ;;  %v35_v59 = vld [vmem:[%s3207_s0 + $0x48] sm:$0xff] }
 0x55c   :  { %v2450_v53 = vpop.eup %2449  ;;  %2276 = vmatpush3.msra.mxu1 %v554_v57  ;;  %v34_v57 = vld [vmem:[%s3207_s0 + $0x40] sm:$0xff] }
 0x55d   :  { %2277 = vmatprep.subr.mxu1 %v552_v54  ;;  %v545_v56 = vmul.f32 %v2450_v53, %v2434_v27  ;;  %v2452_v60 = vpop.eup %2451  ;;  %v33_v53 = vld [vmem:[%s3207_s0 + $0x38] sm:$0xff] }
 0x55e   :  { %2278 = vmatpush3.msra.mxu1 %v552_v54  ;;  %v546_v62 = vmul.f32 %v2452_v60, %v2436_v28  ;;  %v156_v54 = vld [vmem:[#allocation2 + $0xa0] sm:$0xff]  ;;  %v153_v60 = vld [vmem:[#allocation2 + $0x88] sm:$0xff] }
 0x55f   :  { %2280 = vmatmul.mubr.msk.f32.vlgmr.msra.gmra.mxu1 %vm54_vm0, %v544_v55  ;;  %v155_v55 = vld [vmem:[#allocation2 + $0x98] sm:$0xff]  ;;  %2302 = vmatprep.subr.mxu1 %v156_v54 }
 0x560   :  { %v2454_v61 = vpop.eup %2453  ;;  %2282 = vmatprep.mubr.msk.f32.mxu1 %vm54_vm0, %v545_v56  ;;  %2303 = vmatpush3.msra.mxu1 %v156_v54  ;;  %v154_v56 = vld [vmem:[#allocation2 + $0x90] sm:$0xff] }
 0x561   :  { %v547_v1 = vmul.f32 %v2454_v61, %v2438_v31  ;;  %v2456_v2 = vpop.eup %2455  ;;  %2304 = vmatprep.subr.mxu1 %v155_v55  ;;  %v152_v61 = vld [vmem:[#allocation2 + $0x80] sm:$0xff] }
 0x562   :  { %v548_v6 = vmul.f32 %v2456_v2, %v2440_v32  ;;  %2305 = vmatpush3.msra.mxu1 %v155_v55 }
 0x563   :  { %2283 = vmatmul.mubr.msk.f32.gmra.mxu1 %vm54_vm0, %v546_v62  ;;  %2306 = vmatprep.subr.mxu1 %v154_v56  ;;  %v151_v62 = vld [vmem:[#allocation2 + $0x78] sm:$0xff] }
 0x564   :  { %v2458_v5 = vpop.eup %2457  ;;  %2285 = vmatprep.mubr.msk.f32.mxu1 %vm54_vm0, %v547_v1  ;;  %2307 = vmatpush3.msra.mxu1 %v154_v56 }
 0x565   :  { %v549_v11 = vmul.f32 %v2458_v5, %v2442_v35  ;;  %v2460_v12 = vpop.eup %2459  ;;  %2308 = vmatprep.subr.mxu1 %v153_v60 }
 0x566   :  { %v550_v14 = vmul.f32 %v2460_v12, %v2444_v36  ;;  %2309 = vmatpush3.msra.mxu1 %v153_v60 }
 0x567   :  { %2286 = vmatmul.mubr.msk.f32.gmra.mxu1 %vm54_vm0, %v548_v6  ;;  %2310 = vmatprep.subr.mxu1 %v152_v61 }
 0x568   :  { %2288 = vmatprep.mubr.msk.f32.mxu1 %vm54_vm0, %v549_v11  ;;  %2311 = vmatpush3.msra.mxu1 %v152_v61 }
 0x569   :  { %2312 = vmatprep.subr.mxu1 %v151_v62 }
 0x56a   :  { %2313 = vmatpush3.msra.mxu1 %v151_v62 }
 0x56b   :  { %2289 = vmatmul.mubr.msk.f32.gmra.mxu1 %vm54_vm0, %v550_v14 }
 0x61f   :  { %v2281_v19 = vpop.f32.mrf.mxu1 }
 0x620   :  { %v687_v29 = vmul.f32 %v2281_v19, %v2683_v63 }
 0x621   :  { %v647_v20 = vpop.f32.mrf.mxu1 }
 0x622   :  { %v686_v27 = vmul.f32 %v647_v20, %v2666_v58 }
 0x623   :  { %v2284_v21 = vpop.f32.mrf.mxu1 }
 0x624   :  { %v689_v25 = vmul.f32 %v2284_v21, %v2698_v3 }
 0x625   :  { %v657_v22 = vpop.f32.mrf.mxu1 }
 0x626   :  { %v688_v24 = vmul.f32 %v657_v22, %v2688_v0  ;;  %v695_v33 = vadd.f32 %v689_v25, %v687_v29  ;;  %v149_v25 = vld [vmem:[#allocation2 + $0x68] sm:$0xff]  ;;  %v147_v29 = vld [vmem:[#allocation2 + $0x58] sm:$0xff] }
 0x627   :  { %v2287_v23 = vpop.f32.mrf.mxu1 }
 0x628   :  { %v691_v30 = vmul.f32 %v2287_v23, %v2714_v7  ;;  %v694_v32 = vadd.f32 %v688_v24, %v686_v27  ;;  %v150_v24 = vld [vmem:[#allocation2 + $0x70] sm:$0xff]  ;;  %v831_v27 = vsub.s32 3, %v2647_v43 }
 0x629   :  { %v667_v26 = vpop.f32.mrf.mxu1  ;;  %2314 = vmatprep.subr.mxu1 %v150_v24 }
 0x62a   :  { %v690_v28 = vmul.f32 %v667_v26, %v2704_v4  ;;  %v697_v37 = vadd.f32 %v695_v33, %v691_v30  ;;  %v825_v26 = vsub.s32 2, %v2647_v43  ;;  %2315 = vmatpush3.msra.mxu1 %v150_v24  ;;  %v832_v33 = vrot.slane %v2650_v45, %v831_v27  ;;  %v157_v24 = vld [vmem:[#allocation2 + $0xa8] sm:$0xff] }
 0x62b   :  { %v2290_v31 = vpop.f32.mrf.mxu1  ;;  %2316 = vmatprep.subr.mxu1 %v149_v25 }
 0x62c   :  { %v693_v34 = vmul.f32 %v2290_v31, %v2730_v13  ;;  %v696_v36 = vadd.f32 %v694_v32, %v690_v28  ;;  %2317 = vmatpush3.msra.mxu1 %v149_v25  ;;  %v148_v28 = vld [vmem:[#allocation2 + $0x60] sm:$0xff]  ;;  %v826_v30 = vrot.slane %v2650_v45, %v825_v26 }
 0x62d   :  { %v677_v35 = vpop.f32.mrf.mxu1  ;;  %2318 = vmatprep.subr.mxu1 %v148_v28  ;;  %v180_v25 = vld [vmem:[#allocation2 + $0x160] sm:$0xff] }
 0x62e   :  { %v692_v0 = vmul.f32 %v677_v35, %v2720_v10  ;;  %v699_v38 = vadd.f32 %v697_v37, %v693_v34  ;;  %2319 = vmatpush3.msra.mxu1 %v148_v28  ;;  %v146_v34 = vld [vmem:[#allocation2 + $0x50] sm:$0xff]  ;;  %v179_v28 = vld [vmem:[#allocation2 + $0x158] sm:$0xff] }
 0x62f   :  { %2320 = vmatprep.subr.mxu1 %v147_v29 }
 0x630   :  { %v698_v3 = vadd.f32 %v696_v36, %v692_v0  ;;  %2321 = vmatpush3.msra.mxu1 %v147_v29  ;;  %v145_v0 = vld [vmem:[#allocation2 + $0x48] sm:$0xff]  ;;  %v178_v29 = vld [vmem:[#allocation2 + $0x150] sm:$0xff] }
 0x631   :  { %2322 = vmatprep.subr.mxu1 %v146_v34 }
 0x632   :  { %2299 = vmatprep.mubr.msk.f32.mxu0 %vm181_vm1, %v698_v3  ;;  %2323 = vmatpush3.msra.mxu1 %v146_v34  ;;  %v894_v34 = vsub.s32 4, %v2647_v43 }
 0x633   :  { %2300 = vmatmul.mubr.msk.f32.vlgmr.msra.gmra.mxu0 %vm181_vm1, %v699_v38  ;;  %2324 = vmatprep.subr.mxu1 %v145_v0 }
 0x634   :  { %2325 = vmatpush3.msra.mxu1 %v145_v0 }
 0x6f3   :  { %v2301_v58 = vpop.f32.mrf.mxu0 }
 0x6f4   :  { %v2800_v63 = vadd.f32 %v2301_v58, %v2637_v9 }
 0x6f5   :  { %v772_v4 = vpop.f32.mrf.mxu0 }
 0x6f6   :  { %v2803_v7 = vadd.f32 %v772_v4, %v2635_v8  ;;  %v786_v13 = vsel %vm181_vm1, %v2800_v63, 0.0 }
 0x6f7   :  { %787 = vadd.xlane.f32.xlu0 %v786_v13 }
 0x6f8   :  { %v783_v10 = vsel %vm181_vm1, %v2803_v7, 0.0 }
 0x6f9   :  { %784 = vadd.xlane.f32.xlu1 %v783_v10 }
 0x780   :  { %v788_v40 = vpop.xlane.xlu0 %787 }
 0x781   :  { %v790_v41 = vmul.f32 0.03125, %v788_v40 }
 0x782   :  { %v785_v42 = vpop.xlane.xlu1 %784 }
 0x783   :  { %v2810_v9 = vsub.f32 %v2800_v63, %v790_v41  ;;  %v789_v47 = vmul.f32 0.03125, %v785_v42 }
 0x785   :  { %v2813_v8 = vsub.f32 %v2803_v7, %v789_v47  ;;  %v794_v48 = vmul.f32 %v2810_v9, %v2810_v9 }
 0x787   :  { %v798_v49 = vsel %vm181_vm1, %v794_v48, 0.0  ;;  %v793_v50 = vmul.f32 %v2813_v8, %v2813_v8 }
 0x788   :  { %799 = vadd.xlane.f32.xlu1 %v798_v49 }
 0x789   :  { %v795_v51 = vsel %vm181_vm1, %v793_v50, 0.0 }
 0x78a   :  { %796 = vadd.xlane.f32.xlu0 %v795_v51 }
 0x799   :  { %866 = vperm.xlu1 %2420, %v35_v59  }
 0x79d   :  { %844 = vperm.xlu1 %2420, %v32_v52  }
 0x7a0   :  { %861 = vperm.xlu0 %2419, %v34_v57  }
 0x7a1   :  { %849 = vperm.xlu1 %2420, %v33_v53  }
 0x811   :  { %v800_v1 = vpop.xlane.xlu1 %799 }
 0x812   :  { %v802_v2 = vmul.f32 0.032258064, %v800_v1  ;;  %v172_v1 = vld [vmem:[#allocation2 + $0x120] sm:$0xff] }
 0x813   :  { %v797_v5 = vpop.xlane.xlu0 %796 }
 0x814   :  { %2461 = vrsqrt.f32 %v802_v2  ;;  %v801_v6 = vmul.f32 0.032258064, %v797_v5  ;;  %vm812_vm6 = vcmp.eq.f32.partialorder %v802_v2, inf  ;;  %v815_v14 = vand.u32 2147483648, %v802_v2  ;;  %v171_v5 = vld [vmem:[#allocation2 + $0x118] sm:$0xff] }
 0x815   :  { %vm814_vm7 = vcmp.eq.f32.partialorder %v802_v2, 0.0  ;;  %v2859_v48 = vpop.permute.xlu1 %866 }
 0x816   :  { %2463 = vrsqrt.f32 %v801_v6  ;;  %vm805_vm8 = vcmp.eq.f32.partialorder %v801_v6, inf  ;;  %v808_v20 = vand.u32 2147483648, %v801_v6  ;;  %vm807_vm9 = vcmp.eq.f32.partialorder %v801_v6, 0.0 }
 0x819   :  { %v2863_v50 = vpop.permute.xlu1 %844 }
 0x81b   :  { %v2846_v10 = vpop.permute.xlu0 %861 }
 0x81d   :  { %v2865_v51 = vpop.permute.xlu1 %849 }
 0x821   :  { %v2462_v11 = vpop.eup %2461 }
 0x822   :  { %v811_v12 = vmul.f32 %v2462_v11, %v802_v2  ;;  %v169_v11 = vld [vmem:[#allocation2 + $0x108] sm:$0xff] }
 0x823   :  { %v2464_v15 = vpop.eup %2463 }
 0x824   :  { %v813_v16 = vsel %vm812_vm6, %v802_v2, %v811_v12  ;;  %v804_v18 = vmul.f32 %v2464_v15, %v801_v6  ;;  %v2592_v2 = vmov 0.0   ;;  %v168_v12 = vld [vmem:[#allocation2 + $0x100] sm:$0xff]  ;;  %v166_v15 = vld [vmem:[#allocation2 + $0xf0] sm:$0xff] }
 0x825   :  { %v816_v17 = vsel %vm814_vm7, %v815_v14, %v813_v16  ;;  %1012 = vmatprep.subr.mxu0 %v2592_v2  ;;  %v167_v14 = vld [vmem:[#allocation2 + $0xf8] sm:$0xff]  ;;  %v165_v16 = vld [vmem:[#allocation2 + $0xe8] sm:$0xff] }
 0x826   :  { %v818_v19 = vadd.f32 1e-06, %v816_v17  ;;  %v806_v21 = vsel %vm805_vm8, %v801_v6, %v804_v18  ;;  %1013 = vmatpush1.msra.mxu0 %v172_v1  ;;  %v170_v6 = vld [vmem:[#allocation2 + $0x110] sm:$0xff]  ;;  %v164_v17 = vld [vmem:[#allocation2 + $0xe0] sm:$0xff]  ;;  %v163_v18 = vld [vmem:[#allocation2 + $0xd8] sm:$0xff] }
 0x827   :  { %v809_v22 = vsel %vm807_vm9, %v808_v20, %v806_v21  ;;  %1014 = vmatprep.subr.mxu0 %v2592_v2  ;;  %v161_v20 = vld [vmem:[#allocation2 + $0xc8] sm:$0xff]  ;;  %v160_v21 = vld [vmem:[#allocation2 + $0xc0] sm:$0xff] }
 0x828   :  { %2465 = vrcp.f32 %v818_v19  ;;  %v817_v23 = vadd.f32 1e-06, %v809_v22  ;;  %1015 = vmatpush1.msra.mxu0 %v171_v5  ;;  %v162_v19 = vld [vmem:[#allocation2 + $0xd0] sm:$0xff]  ;;  %v159_v22 = vld [vmem:[#allocation2 + $0xb8] sm:$0xff] }
 0x829   :  { %1016 = vmatprep.subr.mxu0 %v2592_v2 }
 0x82a   :  { %2467 = vrcp.f32 %v817_v23  ;;  %1017 = vmatpush1.msra.mxu0 %v170_v6  ;;  %v158_v23 = vld [vmem:[#allocation2 + $0xb0] sm:$0xff] }
 0x82b   :  { %1018 = vmatprep.subr.mxu0 %v2592_v2 }
 0x82c   :  { %1019 = vmatpush1.msra.mxu0 %v169_v11 }
 0x82d   :  { %1020 = vmatprep.subr.mxu0 %v2592_v2 }
 0x82e   :  { %1021 = vmatpush1.msra.mxu0 %v168_v12 }
 0x82f   :  { %1022 = vmatprep.subr.mxu0 %v2592_v2 }
 0x830   :  { %1023 = vmatpush1.msra.mxu0 %v167_v14 }
 0x831   :  { %1024 = vmatprep.subr.mxu0 %v2592_v2 }
 0x832   :  { %1025 = vmatpush1.msra.mxu0 %v166_v15 }
 0x833   :  { %1026 = vmatprep.subr.mxu0 %v2592_v2 }
 0x834   :  { %1027 = vmatpush1.msra.mxu0 %v165_v16 }
 0x835   :  { %v2466_v31 = vpop.eup %2465  ;;  %1028 = vmatprep.subr.mxu0 %v2592_v2 }
 0x836   :  { %v822_v32 = vmul.f32 %v2466_v31, %v2810_v9  ;;  %1029 = vmatpush1.msra.mxu0 %v164_v17  ;;  %v176_v31 = vld [vmem:[#allocation2 + $0x140] sm:$0xff] }
 0x837   :  { %v2468_v35 = vpop.eup %2467  ;;  %1030 = vmatprep.subr.mxu0 %v2592_v2 }
 0x838   :  { %v828_v36 = vmul.f32 %v826_v30, %v822_v32  ;;  %v820_v37 = vmul.f32 %v2468_v35, %v2813_v8  ;;  %1031 = vmatpush1.msra.mxu0 %v163_v18  ;;  %v175_v32 = vld [vmem:[#allocation2 + $0x138] sm:$0xff]  ;;  %v173_v35 = vld [vmem:[#allocation2 + $0x128] sm:$0xff] }
 0x839   :  { %1032 = vmatprep.subr.mxu0 %v2592_v2 }
 0x83a   :  { %v834_v3 = vadd.f32 %v832_v33, %v828_v36  ;;  %v827_v38 = vmul.f32 %v826_v30, %v820_v37  ;;  %1033 = vmatpush1.msra.mxu0 %v162_v19  ;;  %v177_v30 = vld [vmem:[#allocation2 + $0x148] sm:$0xff]  ;;  %v895_v36 = vrot.slane %v2650_v45, %v894_v34 }
 0x83b   :  { %1034 = vmatprep.subr.mxu0 %v2592_v2 }
 0x83c   :  { %875 = vrot.lane.b32.xlu1 %v834_v3, %s2591_s17  ;;  %v833_v58 = vadd.f32 %v832_v33, %v827_v38  ;;  %v836_v4 = vrot.slane %v834_v3, 7  ;;  %v855_v13 = vrot.slane %v834_v3, 1  ;;  %1035 = vmatpush1.msra.mxu0 %v161_v20  ;;  %v174_v33 = vld [vmem:[#allocation2 + $0x130] sm:$0xff] }
 0x83d   :  { %1036 = vmatprep.subr.mxu0 %v2592_v2 }
 0x83e   :  { %v835_v39 = vrot.slane %v833_v58, 7  ;;  %v854_v40 = vrot.slane %v833_v58, 1  ;;  %1037 = vmatpush1.msra.mxu0 %v160_v21 }
 0x83f   :  { %1038 = vmatprep.subr.mxu0 %v2592_v2 }
 0x840   :  { %873 = vrot.lane.b32.xlu1 %v833_v58, %s2591_s17  ;;  %v840_v41 = vsel %vm839_vm10, %v835_v39, %v836_v4  ;;  %v857_v42 = vsel %vm856_vm11, %v854_v40, %v855_v13  ;;  %v841_v9 = vsel %vm839_vm10, %v836_v4, %v835_v39  ;;  %v858_v8 = vsel %vm856_vm11, %v855_v13, %v854_v40 }
 0x841   :  { %v869_v47 = vmul.f32 %v2846_v10, %v857_v42  ;;  %v870_v49 = vmul.f32 %v2859_v48, %v858_v8  ;;  %v852_v57 = vmul.f32 %v2863_v50, %v841_v9  ;;  %v853_v56 = vmul.f32 %v2865_v51, %v840_v41  ;;  %1039 = vmatpush1.msra.mxu0 %v159_v22 }
 0x842   :  { %1040 = vmatprep.subr.mxu0 %v2592_v2 }
 0x843   :  { %1041 = vmatpush1.msra.mxu0 %v158_v23 }
 0x844   :  { %881 = vrot.lane.b32.xlu1 %v869_v47, %s2589_s6  ;;  %1042 = vmatprep.subr.mxu0 %v2592_v2 }
 0x845   :  { %1043 = vmatpush1.msra.mxu0 %v157_v24 }
 0x846   :  { %1060 = vmatprep.subr.mxu0 %v2592_v2 }
 0x847   :  { %1061 = vmatpush2.msra.mxu0 %v180_v25 }
 0x848   :  { %883 = vrot.lane.b32.xlu1 %v870_v49, %s2589_s6  ;;  %1062 = vmatprep.subr.mxu0 %v2592_v2 }
 0x849   :  { %1063 = vmatpush2.msra.mxu0 %v179_v28 }
 0x84a   :  { %1064 = vmatprep.subr.mxu0 %v2592_v2 }
 0x84b   :  { %1065 = vmatpush2.msra.mxu0 %v178_v29  ;;  %v1095_v29 = vld [vmem:[#allocation2 + $0x188] sm:$0xff] }
 0x84c   :  { %1066 = vmatprep.subr.mxu0 %v2592_v2  ;;  %2329 = vmatprep.subr.mxu1 %v1095_v29 }
 0x84d   :  { %1067 = vmatpush2.msra.mxu0 %v177_v30  ;;  %v1094_v30 = vld [vmem:[#allocation2 + $0x180] sm:$0xff] }
 0x84e   :  { %1068 = vmatprep.subr.mxu0 %v2592_v2 }
 0x84f   :  { %1069 = vmatpush2.msra.mxu0 %v176_v31  ;;  %v1093_v31 = vld [vmem:[#allocation2 + $0x178] sm:$0xff] }
 0x850   :  { %1070 = vmatprep.subr.mxu0 %v2592_v2 }
 0x851   :  { %1071 = vmatpush2.msra.mxu0 %v175_v32  ;;  %v1092_v32 = vld [vmem:[#allocation2 + $0x170] sm:$0xff] }
 0x852   :  { %1072 = vmatprep.subr.mxu0 %v2592_v2 }
 0x853   :  { %1073 = vmatpush2.msra.mxu0 %v174_v33 }
 0x854   :  { %1074 = vmatprep.subr.mxu0 %v2592_v2 }
 0x855   :  { %1075 = vmatpush2.msra.mxu0 %v173_v35 }
 0x8ae   :  { %v876_v59 = vpop.permute.xlu1 %875 }
 0x8af   :  { %v888_v60 = vsel %vm181_vm1, %v853_v56, %v876_v59 }
 0x8b2   :  { %v874_v52 = vpop.permute.xlu1 %873 }
 0x8b3   :  { %v887_v53 = vsel %vm181_vm1, %v852_v57, %v874_v52 }
 0x8b6   :  { %v882_v54 = vpop.permute.xlu1 %881 }
 0x8b7   :  { %v890_v55 = vsel %vm889_vm12, %v887_v53, %v882_v54 }
 0x8b8   :  { %2326 = vmatprep.mubr.msk.f32.mxu1 %vm896_vm13, %v890_v55 }
 0x8ba   :  { %v884_v61 = vpop.permute.xlu1 %883 }
 0x8bb   :  { %v891_v62 = vsel %vm889_vm12, %v888_v60, %v884_v61  ;;  %v1004_v60 = vsub.s32 5, %v2647_v43 }
 0x8bc   :  { %2327 = vmatmul.mubr.msk.f32.vlgmr.msra.gmra.mxu1 %vm896_vm13, %v891_v62 }
 0x8bd   :  { %v1005_v61 = vrot.slane %v2650_v45, %v1004_v60  ;;  %2330 = vmatpush3.msra.mxu1 %v1095_v29  ;;  %v2533_v29 = vld [vmem:[%s3207_s0 + $0xa8] sm:$0xff] }
 0x8be   :  { %2331 = vmatprep.subr.mxu1 %v1094_v30 }
 0x8bf   :  { %2332 = vmatpush3.msra.mxu1 %v1094_v30 }
 0x8c0   :  { %2333 = vmatprep.subr.mxu1 %v1093_v31 }
 0x8c1   :  { %2334 = vmatpush3.msra.mxu1 %v1093_v31 }
 0x8c2   :  { %2335 = vmatprep.subr.mxu1 %v1092_v32 }
 0x8c3   :  { %2336 = vmatpush3.msra.mxu1 %v1092_v32  ;;  %v2534_v32 = vld [vmem:[%s3207_s0 + $0xa0] sm:$0xff] }
 0x97c   :  { %v2328_v0 = vpop.f32.mrf.mxu1 }
 0x97d   :  { %v975_v37 = vadd.f32 %v2328_v0, %v895_v36 }
 0x97e   :  { %v969_v3 = vpop.f32.mrf.mxu1 }
 0x97f   :  { %v979_v38 = vmax.f32 %v975_v37, 0.0  ;;  %v970_v58 = vadd.f32 %v969_v3, %v895_v36 }
 0x981   :  { %v978_v4 = vmax.f32 %v970_v58, 0.0  ;;  %996 = vrot.lane.b32.xlu0 %v979_v38, %s2589_s6  ;;  %v981_v13 = vrot.slane %v979_v38, 7  ;;  %v987_v39 = vrot.slane %v979_v38, 1 }
 0x983   :  { %v980_v40 = vrot.slane %v978_v4, 7  ;;  %v986_v41 = vrot.slane %v978_v4, 1  ;;  %994 = vrot.lane.b32.xlu1 %v978_v4, %s2589_s6 }
 0x985   :  { %v988_v42 = vsel %vm856_vm11, %v986_v41, %v987_v39  ;;  %v983_v9 = vsel %vm839_vm10, %v981_v13, %v980_v40  ;;  %v989_v47 = vsel %vm856_vm11, %v987_v39, %v986_v41  ;;  %v982_v8 = vsel %vm839_vm10, %v980_v40, %v981_v13 }
 0x986   :  { %v990_v49 = vmul.f32 %v988_v42, %v2846_v10  ;;  %v984_v59 = vmul.f32 %v983_v9, %v2863_v50  ;;  %v991_v53 = vmul.f32 %v989_v47, %v2859_v48  ;;  %v985_v55 = vmul.f32 %v982_v8, %v2865_v51  ;;  %v2939_v8 = vld [vmem:[#allocation2 + $0x168] sm:$0xff] }
 0x988   :  { %2115 = vmatprep.mubr.msk.f32.mxu0 %vm889_vm12, %v990_v49  ;;  %v1179_v49 = vrot.slane %v2939_v8, %v225_v44 }
 0x9f3   :  { %v997_v54 = vpop.permute.xlu0 %996 }
 0x9f4   :  { %v1001_v56 = vsel %vm889_vm12, %v985_v55, %v997_v54 }
 0x9f5   :  { %v995_v52 = vpop.permute.xlu1 %994 }
 0x9f6   :  { %v1000_v57 = vsel %vm889_vm12, %v984_v59, %v995_v52 }
 0x9f7   :  { %1077 = vmatmul.mubr.f32.vlgmr.msra.gmra.mxu0 %v1000_v57  ;;  %v1185_v57 = vrot.slane %v2939_v8, %v231_v46  ;;  %v2960_v46 = vld [vmem:[%s3207_s0 + $0x60] sm:$0xff] }
 0x9f8   :  { %2116 = vmatprep.mubr.msk.f32.mxu0 %vm889_vm12, %v991_v53 }
 0x9fb   :  { %1082 = vmatmul.mubr.f32.gmra.mxu0 %v1001_v56 }
 0xab7   :  { %v1078_v62 = vpop.f32.mrf.mxu0 }
 0xab8   :  { %v1079_v1 = vadd.f32 %v1078_v62, %v1005_v61 }
 0xab9   :  { %v1080_v5 = vpop.f32.mrf.mxu0 }
 0xaba   :  { %v1087_v6 = vmax.f32 %v1079_v1, 0.0 }
 0xabb   :  { %v1083_v11 = vpop.f32.mrf.mxu0 }
 0xabc   :  { %v2926_v12 = vadd.f32 %v1087_v6, %v2803_v7  ;;  %v1084_v14 = vadd.f32 %v1083_v11, %v1005_v61 }
 0xabd   :  { %v1085_v15 = vpop.f32.mrf.mxu0 }
 0xabe   :  { %v1088_v16 = vmax.f32 %v1084_v14, 0.0  ;;  %v1136_v17 = vsel %vm181_vm1, %v2926_v12, 0.0  ;;  %v2972_v14 = vld [vmem:[%s3207_s0 + $0x68] sm:$0xff] }
 0xabf   :  { %1137 = vadd.xlane.f32.xlu1 %v1136_v17 }
 0xac0   :  { %v2931_v18 = vadd.f32 %v1088_v16, %v2800_v63  ;;  %v2979_v16 = vld [vmem:[%s3207_s0 + $0x70] sm:$0xff] }
 0xac2   :  { %v1139_v45 = vsel %vm181_vm1, %v2931_v18, 0.0 }
 0xac3   :  { %1140 = vadd.xlane.f32.xlu0 %v1139_v45  ;;  %v2988_v45 = vld [vmem:[%s3207_s0 + $0x78] sm:$0xff] }
 0xb48   :  { %v1138_v19 = vpop.xlane.xlu1 %1137 }
 0xb49   :  { %v1142_v20 = vmul.f32 0.03125, %v1138_v19 }
 0xb4b   :  { %v1144_v21 = vsub.f32 %v2926_v12, %v1142_v20  ;;  %v2995_v20 = vld [vmem:[%s3207_s0 + $0x80] sm:$0xff] }
 0xb4c   :  { %v1141_v7 = vpop.xlane.xlu0 %1140 }
 0xb4d   :  { %v1143_v22 = vmul.f32 0.03125, %v1141_v7  ;;  %v1146_v23 = vmul.f32 %v1144_v21, %v1144_v21  ;;  %v3004_v7 = vld [vmem:[%s3207_s0 + $0x88] sm:$0xff] }
 0xb4f   :  { %v1145_v24 = vsub.f32 %v2931_v18, %v1143_v22  ;;  %v1148_v25 = vsel %vm181_vm1, %v1146_v23, 0.0  ;;  %v3011_v23 = vld [vmem:[%s3207_s0 + $0x90] sm:$0xff] }
 0xb50   :  { %1149 = vadd.xlane.f32.xlu0 %v1148_v25  ;;  %v3020_v25 = vld [vmem:[%s3207_s0 + $0x98] sm:$0xff] }
 0xb51   :  { %v1147_v28 = vmul.f32 %v1145_v24, %v1145_v24 }
 0xb53   :  { %v1151_v63 = vsel %vm181_vm1, %v1147_v28, 0.0 }
 0xb54   :  { %1152 = vadd.xlane.f32.xlu1 %v1151_v63 }
 0xbd9   :  { %v1150_v33 = vpop.xlane.xlu0 %1149 }
 0xbda   :  { %v1154_v35 = vmul.f32 0.032258064, %v1150_v33 }
 0xbdc   :  { %2469 = vrsqrt.f32 %v1154_v35  ;;  %vm1158_vm14 = vcmp.eq.f32.partialorder %v1154_v35, inf  ;;  %v1161_v38 = vand.u32 2147483648, %v1154_v35  ;;  %vm1160_vm15 = vcmp.eq.f32.partialorder %v1154_v35, 0.0 }
 0xbdd   :  { %v1153_v36 = vpop.xlane.xlu1 %1152 }
 0xbde   :  { %v1155_v0 = vmul.f32 0.032258064, %v1153_v36 }
 0xbe0   :  { %2471 = vrsqrt.f32 %v1155_v0  ;;  %vm1165_vm2 = vcmp.eq.f32.partialorder %v1155_v0, inf  ;;  %v1168_v41 = vand.u32 2147483648, %v1155_v0  ;;  %vm1167_vm3 = vcmp.eq.f32.partialorder %v1155_v0, 0.0 }
 0xbe9   :  { %v2470_v37 = vpop.eup %2469 }
 0xbea   :  { %v1157_v3 = vmul.f32 %v2470_v37, %v1154_v35 }
 0xbec   :  { %v1159_v58 = vsel %vm1158_vm14, %v1154_v35, %v1157_v3 }
 0xbed   :  { %v2472_v4 = vpop.eup %2471  ;;  %v1162_v13 = vsel %vm1160_vm15, %v1161_v38, %v1159_v58  ;;  %v2536_v58 = vld [vmem:[%s3207_s0 + $0xb0] sm:$0xff] }
 0xbee   :  { %v1170_v39 = vadd.f32 1e-06, %v1162_v13  ;;  %v1164_v40 = vmul.f32 %v2472_v4, %v1155_v0 }
 0xbf0   :  { %2473 = vrcp.f32 %v1170_v39  ;;  %v1166_v42 = vsel %vm1165_vm2, %v1155_v0, %v1164_v40  ;;  %v2535_v0 = vld [vmem:[%s3207_s0 + $0xb8] sm:$0xff]  ;;  %v2537_v39 = vld [vmem:[%s3207_s0 + $0xc8] sm:$0xff] }
 0xbf1   :  { %v1169_v9 = vsel %vm1167_vm3, %v1168_v41, %v1166_v42 }
 0xbf2   :  { %v1171_v47 = vadd.f32 1e-06, %v1169_v9 }
 0xbf4   :  { %2475 = vrcp.f32 %v1171_v47  ;;  %v2538_v47 = vld [vmem:[%s3207_s0 + $0xc0] sm:$0xff] }
 0xbfd   :  { %v2474_v59 = vpop.eup %2473 }
 0xbfe   :  { %v1173_v52 = vmul.f32 %v2474_v59, %v1144_v21 }
 0xc00   :  { %v1180_v53 = vmul.f32 %v1179_v49, %v1173_v52  ;;  %v2539_v52 = vld [vmem:[%s3207_s0 + $0xd8] sm:$0xff] }
 0xc01   :  { %v2476_v54 = vpop.eup %2475 }
 0xc02   :  { %v1175_v55 = vmul.f32 %v2476_v54, %v1145_v24  ;;  %v1186_v56 = vadd.f32 %v1185_v57, %v1180_v53 }
 0xc04   :  { %v1181_v61 = vmul.f32 %v1179_v49, %v1175_v55  ;;  %2337 = vmatprep.mubr.msk.f32.mxu1 %vm181_vm1, %v1186_v56  ;;  %v2540_v56 = vld [vmem:[%s3207_s0 + $0xd0] sm:$0xff] }
 0xc06   :  { %v1187_v62 = vadd.f32 %v1185_v57, %v1181_v61 }
 0xc08   :  { %2338 = vmatmul.mubr.msk.f32.vlgmr.msra.gmra.mxu1 %vm181_vm1, %v1187_v62 }
 0xcc8   :  { %v2949_v1 = vpop.f32.mrf.mxu1 }
 0xcc9   :  { %1281 = vrot.lane.b32.xlu0 %v2949_v1, %s2588_s29  ;;  %v1270_v15 = vmul.f32 %v2972_v14, %v2949_v1  ;;  %v1272_v19 = vmul.f32 %v2988_v45, %v2949_v1  ;;  %v1274_v22 = vmul.f32 %v3004_v7, %v2949_v1  ;;  %v1276_v28 = vmul.f32 %v3020_v25, %v2949_v1 }
 0xcca   :  { %v2953_v44 = vpop.f32.mrf.mxu1 }
 0xccb   :  { %1279 = vrot.lane.b32.xlu1 %v2953_v44, %s2588_s29  ;;  %v1269_v5 = vmul.f32 %v2960_v46, %v2953_v44  ;;  %v1271_v17 = vmul.f32 %v2979_v16, %v2953_v44  ;;  %v1273_v21 = vmul.f32 %v2995_v20, %v2953_v44  ;;  %v1275_v24 = vmul.f32 %v3011_v23, %v2953_v44 }
 0xccd   :  { %2344 = vmatprep.mubr.msk.f32.mxu1 %vm181_vm1, %v1269_v5 }
 0xd3b   :  { %v1282_v6 = vpop.permute.xlu0 %1281 }
 0xd3c   :  { %2340 = vmatprep.subr.msk.mxu1 %vm181_vm1, %v1282_v6 }
 0xd3d   :  { %2341 = vmatpush3.xpose.msk.msra.mxu1 %vm181_vm1, %v1282_v6  ;;  %v1280_v11 = vpop.permute.xlu1 %1279 }
 0xd3e   :  { %2342 = vmatprep.subr.msk.mxu1 %vm181_vm1, %v1280_v11 }
 0xd41   :  { %2343 = vmatpush3.xpose.msk.msra.mxu1 %vm181_vm1, %v1280_v11 }
 0xd44   :  { %2345 = vmatmul.mubr.msk.f32.vlgmr.msra.gmra.mxu1 %vm181_vm1, %v1270_v15 }
 0xd45   :  { %2347 = vmatprep.mubr.msk.f32.mxu1 %vm181_vm1, %v1271_v17 }
 0xd48   :  { %2348 = vmatmul.mubr.msk.f32.gmra.mxu1 %vm181_vm1, %v1272_v19 }
 0xd49   :  { %2350 = vmatprep.mubr.msk.f32.mxu1 %vm181_vm1, %v1273_v21 }
 0xd4c   :  { %2351 = vmatmul.mubr.msk.f32.gmra.mxu1 %vm181_vm1, %v1274_v22 }
 0xd4d   :  { %2353 = vmatprep.mubr.msk.f32.mxu1 %vm181_vm1, %v1275_v24 }
 0xd50   :  { %2354 = vmatmul.mubr.msk.f32.gmra.mxu1 %vm181_vm1, %v1276_v28 }
 0xe04   :  { %v2346_v63 = vpop.f32.mrf.mxu1 }
 0xe05   :  { %v1383_v30 = vadd.f32 %v2533_v29, %v2346_v63 }
 0xe06   :  { %v1377_v31 = vpop.f32.mrf.mxu1 }
 0xe07   :  { %v1378_v33 = vadd.f32 %v2534_v32, %v1377_v31  ;;  %v1419_v35 = vsel %vm54_vm0, %v1383_v30, -inf }
 0xe08   :  { %1420 = vmax.xlane.f32.xlu0 %v1419_v35  ;;  %v2349_v36 = vpop.f32.mrf.mxu1 }
 0xe09   :  { %v1393_v37 = vadd.f32 %v2535_v0, %v2349_v36  ;;  %v1416_v3 = vsel %vm54_vm0, %v1378_v33, -inf }
 0xe0a   :  { %v1387_v38 = vpop.f32.mrf.mxu1  ;;  %1417 = vmax.xlane.f32.xlu1 %v1416_v3 }
 0xe0b   :  { %v1388_v4 = vadd.f32 %v2536_v58, %v1387_v38  ;;  %v1425_v42 = vsel %vm54_vm0, %v1393_v37, -inf }
 0xe0c   :  { %v2352_v13 = vpop.f32.mrf.mxu1 }
 0xe0d   :  { %v1403_v40 = vadd.f32 %v2537_v39, %v2352_v13  ;;  %v1422_v41 = vsel %vm54_vm0, %v1388_v4, -inf }
 0xe0e   :  { %v1397_v9 = vpop.f32.mrf.mxu1  ;;  %1423 = vmax.xlane.f32.xlu0 %v1422_v41  ;;  %1426 = vmax.xlane.f32.xlu1 %v1425_v42 }
 0xe0f   :  { %v1398_v49 = vadd.f32 %v2538_v47, %v1397_v9  ;;  %v1431_v54 = vsel %vm54_vm0, %v1403_v40, -inf }
 0xe10   :  { %v2355_v59 = vpop.f32.mrf.mxu1 }
 0xe11   :  { %v1413_v57 = vadd.f32 %v2539_v52, %v2355_v59  ;;  %v1428_v53 = vsel %vm54_vm0, %v1398_v49, -inf }
 0xe12   :  { %v1407_v55 = vpop.f32.mrf.mxu1  ;;  %1429 = vmax.xlane.f32.xlu0 %v1428_v53  ;;  %1432 = vmax.xlane.f32.xlu1 %v1431_v54 }
 0xe13   :  { %v1408_v61 = vadd.f32 %v2540_v56, %v1407_v55  ;;  %v1437_v5 = vsel %vm54_vm0, %v1413_v57, -inf }
 0xe15   :  { %v1434_v62 = vsel %vm54_vm0, %v1408_v61, -inf }
 0xe16   :  { %1435 = vmax.xlane.f32.xlu0 %v1434_v62  ;;  %1438 = vmax.xlane.f32.xlu1 %v1437_v5 }
 0xe91   :  { %v1421_v6 = vpop.xlane.xlu0 %1420 }
 0xe92   :  { %v1441_v11 = vsub.f32 %v1383_v30, %v1421_v6 }
 0xe93   :  { %v1418_v15 = vpop.xlane.xlu1 %1417 }
 0xe94   :  { %v1450_v17 = vmul.f32 1.442695, %v1441_v11  ;;  %v1440_v19 = vsub.f32 %v1378_v33, %v1418_v15 }
 0xe96   :  { %2477 = vpow2.f32 %v1450_v17  ;;  %v1448_v21 = vmul.f32 1.442695, %v1440_v19 }
 0xe97   :  { %v1424_v22 = vpop.xlane.xlu0 %1423  ;;  %v1427_v24 = vpop.xlane.xlu1 %1426 }
 0xe98   :  { %2479 = vpow2.f32 %v1448_v21  ;;  %v1442_v28 = vsub.f32 %v1388_v4, %v1424_v22  ;;  %v1443_v63 = vsub.f32 %v1393_v37, %v1427_v24 }
 0xe9a   :  { %v1452_v29 = vmul.f32 1.442695, %v1442_v28  ;;  %v1454_v31 = vmul.f32 1.442695, %v1443_v63 }
 0xe9b   :  { %v1430_v32 = vpop.xlane.xlu0 %1429  ;;  %v1433_v35 = vpop.xlane.xlu1 %1432 }
 0xe9c   :  { %2481 = vpow2.f32 %v1452_v29  ;;  %v1444_v36 = vsub.f32 %v1398_v49, %v1430_v32  ;;  %v1445_v0 = vsub.f32 %v1403_v40, %v1433_v35 }
 0xe9d   :  { %2483 = vpow2.f32 %v1454_v31 }
 0xe9e   :  { %v1456_v3 = vmul.f32 1.442695, %v1444_v36  ;;  %v1458_v30 = vmul.f32 1.442695, %v1445_v0 }
 0xe9f   :  { %v1436_v38 = vpop.xlane.xlu0 %1435  ;;  %v1439_v58 = vpop.xlane.xlu1 %1438 }
 0xea0   :  { %2485 = vpow2.f32 %v1456_v3  ;;  %v1446_v33 = vsub.f32 %v1408_v61, %v1436_v38  ;;  %v1447_v13 = vsub.f32 %v1413_v57, %v1439_v58 }
 0xea1   :  { %2487 = vpow2.f32 %v1458_v30 }
 0xea2   :  { %v1460_v39 = vmul.f32 1.442695, %v1446_v33  ;;  %v1462_v41 = vmul.f32 1.442695, %v1447_v13 }
 0xea3   :  { %v2478_v4 = vpop.eup %2477 }
 0xea4   :  { %2489 = vpow2.f32 %v1460_v39  ;;  %v1467_v37 = vsel %vm54_vm0, %v2478_v4, 0.0 }
 0xea5   :  { %v2480_v42 = vpop.eup %2479  ;;  %2491 = vpow2.f32 %v1462_v41  ;;  %1468 = vadd.xlane.f32.xlu1 %v1467_v37  ;;  %v1099_v41 = vld [vmem:[#allocation2 + $0x1a8] sm:$0xff]  ;;  %v1097_v37 = vld [vmem:[#allocation2 + $0x198] sm:$0xff] }
 0xea6   :  { %v1464_v40 = vsel %vm54_vm0, %v2480_v42, 0.0  ;;  %2372 = vmatprep.subr.mxu0 %v1099_v41 }
 0xea7   :  { %1465 = vadd.xlane.f32.xlu0 %v1464_v40  ;;  %2373 = vmatpush3.msra.mxu0 %v1099_v41 }
 0xea9   :  { %v2482_v9 = vpop.eup %2481 }
 0xeaa   :  { %v2484_v47 = vpop.eup %2483  ;;  %v1470_v49 = vsel %vm54_vm0, %v2482_v9, 0.0 }
 0xeab   :  { %1471 = vadd.xlane.f32.xlu0 %v1470_v49  ;;  %v1473_v59 = vsel %vm54_vm0, %v2484_v47, 0.0 }
 0xeac   :  { %1474 = vadd.xlane.f32.xlu1 %v1473_v59 }
 0xead   :  { %v2486_v52 = vpop.eup %2485 }
 0xeae   :  { %v2488_v57 = vpop.eup %2487  ;;  %v1476_v53 = vsel %vm54_vm0, %v2486_v52, 0.0 }
 0xeaf   :  { %1477 = vadd.xlane.f32.xlu0 %v1476_v53  ;;  %v1479_v54 = vsel %vm54_vm0, %v2488_v57, 0.0 }
 0xeb0   :  { %1480 = vadd.xlane.f32.xlu1 %v1479_v54 }
 0xeb1   :  { %v2490_v55 = vpop.eup %2489 }
 0xeb2   :  { %v2492_v56 = vpop.eup %2491  ;;  %v1482_v61 = vsel %vm54_vm0, %v2490_v55, 0.0 }
 0xeb3   :  { %1483 = vadd.xlane.f32.xlu0 %v1482_v61  ;;  %v1485_v62 = vsel %vm54_vm0, %v2492_v56, 0.0 }
 0xeb4   :  { %1486 = vadd.xlane.f32.xlu1 %v1485_v62 }
 0xec5   :  { %1504 = vrot.lane.b32.xlu1 %v2953_v44, %s2589_s6 }
 0xec9   :  { %1506 = vrot.lane.b32.xlu0 %v2949_v1, %s2589_s6 }
 0xf2e   :  { %v1469_v5 = vpop.xlane.xlu1 %1468 }
 0xf30   :  { %v1466_v6 = vpop.xlane.xlu0 %1465 }
 0xf31   :  { %2493 = vrcp.f32 %v1466_v6 }
 0xf32   :  { %2495 = vrcp.f32 %v1469_v5 }
 0xf34   :  { %v1472_v11 = vpop.xlane.xlu0 %1471 }
 0xf35   :  { %2497 = vrcp.f32 %v1472_v11  ;;  %v1475_v15 = vpop.xlane.xlu1 %1474 }
 0xf36   :  { %2499 = vrcp.f32 %v1475_v15 }
 0xf38   :  { %v1478_v17 = vpop.xlane.xlu0 %1477 }
 0xf39   :  { %2501 = vrcp.f32 %v1478_v17  ;;  %v1481_v19 = vpop.xlane.xlu1 %1480 }
 0xf3a   :  { %2503 = vrcp.f32 %v1481_v19 }
 0xf3c   :  { %v1484_v21 = vpop.xlane.xlu0 %1483 }
 0xf3d   :  { %2505 = vrcp.f32 %v1484_v21  ;;  %v1487_v22 = vpop.xlane.xlu1 %1486 }
 0xf3e   :  { %v2494_v24 = vpop.eup %2493  ;;  %2507 = vrcp.f32 %v1487_v22 }
 0xf3f   :  { %v1496_v44 = vmul.f32 %v2494_v24, %v2480_v42  ;;  %v2496_v28 = vpop.eup %2495  ;;  %v1096_v42 = vld [vmem:[#allocation2 + $0x190] sm:$0xff] }
 0xf40   :  { %v1507_v1 = vpop.permute.xlu0 %1506  ;;  %v1497_v31 = vmul.f32 %v2496_v28, %v2478_v4  ;;  %v1098_v4 = vld [vmem:[#allocation2 + $0x1a0] sm:$0xff] }
 0xf41   :  { %2356 = vmatprep.subr.mxu1 %v1507_v1  ;;  %2360 = vmatprep.mubr.msk.f32.mxu1 %vm54_vm0, %v1496_v44  ;;  %v1505_v29 = vpop.permute.xlu1 %1504 }
 0xf42   :  { %v2498_v63 = vpop.eup %2497  ;;  %2357 = vmatpush3.msra.mxu1 %v1507_v1  ;;  %2374 = vmatprep.subr.mxu0 %v1098_v4 }
 0xf43   :  { %2358 = vmatprep.subr.mxu1 %v1505_v29  ;;  %v1498_v32 = vmul.f32 %v2498_v63, %v2482_v9  ;;  %v2500_v35 = vpop.eup %2499  ;;  %2375 = vmatpush3.msra.mxu0 %v1098_v4 }
 0xf44   :  { %2359 = vmatpush3.msra.mxu1 %v1505_v29  ;;  %v1499_v0 = vmul.f32 %v2500_v35, %v2484_v47  ;;  %2376 = vmatprep.subr.mxu0 %v1097_v37  ;;  %v1110_v35 = vld [vmem:[#allocation2 + $0x200] sm:$0xff] }
 0xf45   :  { %2361 = vmatmul.mubr.msk.f32.vlgmr.msra.gmra.mxu1 %vm54_vm0, %v1497_v31  ;;  %2377 = vmatpush3.msra.mxu0 %v1097_v37 }
 0xf46   :  { %v2502_v36 = vpop.eup %2501  ;;  %2363 = vmatprep.mubr.msk.f32.mxu1 %vm54_vm0, %v1498_v32  ;;  %2378 = vmatprep.subr.mxu0 %v1096_v42  ;;  %v1111_v32 = vld [vmem:[#allocation2 + $0x208] sm:$0xff] }
 0xf47   :  { %v1500_v3 = vmul.f32 %v2502_v36, %v2486_v52  ;;  %v2504_v30 = vpop.eup %2503  ;;  %2379 = vmatpush3.msra.mxu0 %v1096_v42  ;;  %2383 = vmatprep.subr.mxu1 %v1111_v32  ;;  %v1109_v36 = vld [vmem:[#allocation2 + $0x1f8] sm:$0xff] }
 0xf48   :  { %v1501_v58 = vmul.f32 %v2504_v30, %v2488_v57  ;;  %1939 = vmatprep.subr.mxu0 %v2592_v2  ;;  %2384 = vmatpush3.msra.mxu1 %v1111_v32  ;;  %v1106_v30 = vld [vmem:[#allocation2 + $0x1e0] sm:$0xff] }
 0xf49   :  { %2364 = vmatmul.mubr.msk.f32.gmra.mxu1 %vm54_vm0, %v1499_v0  ;;  %2385 = vmatprep.subr.mxu1 %v1110_v35  ;;  %v1108_v0 = vld [vmem:[#allocation2 + $0x1f0] sm:$0xff] }
 0xf4a   :  { %v2506_v38 = vpop.eup %2505  ;;  %2366 = vmatprep.mubr.msk.f32.mxu1 %vm54_vm0, %v1500_v3  ;;  %2386 = vmatpush3.msra.mxu1 %v1110_v35  ;;  %v1107_v3 = vld [vmem:[#allocation2 + $0x1e8] sm:$0xff] }
 0xf4b   :  { %v1502_v33 = vmul.f32 %v2506_v38, %v2490_v55  ;;  %v2508_v13 = vpop.eup %2507  ;;  %2387 = vmatprep.subr.mxu1 %v1109_v36  ;;  %v1105_v38 = vld [vmem:[#allocation2 + $0x1d8] sm:$0xff] }
 0xf4c   :  { %v1503_v39 = vmul.f32 %v2508_v13, %v2492_v56  ;;  %2388 = vmatpush3.msra.mxu1 %v1109_v36 }
 0xf4d   :  { %2367 = vmatmul.mubr.msk.f32.gmra.mxu1 %vm54_vm0, %v1501_v58  ;;  %2389 = vmatprep.subr.mxu1 %v1108_v0  ;;  %v1104_v58 = vld [vmem:[#allocation2 + $0x1d0] sm:$0xff] }
 0xf4e   :  { %2369 = vmatprep.mubr.msk.f32.mxu1 %vm54_vm0, %v1502_v33  ;;  %2390 = vmatpush3.msra.mxu1 %v1108_v0 }
 0xf4f   :  { %2391 = vmatprep.subr.mxu1 %v1107_v3 }
 0xf50   :  { %2392 = vmatpush3.msra.mxu1 %v1107_v3 }
 0xf51   :  { %2370 = vmatmul.mubr.msk.f32.gmra.mxu1 %vm54_vm0, %v1503_v39  ;;  %2393 = vmatprep.subr.mxu1 %v1106_v30 }
 0xf52   :  { %2394 = vmatpush3.msra.mxu1 %v1106_v30  ;;  %v1127_v30 = vld [vmem:[#allocation2 + $0x288] sm:$0xff] }
 0xf53   :  { %2395 = vmatprep.subr.mxu1 %v1105_v38 }
 0xf54   :  { %2396 = vmatpush3.msra.mxu1 %v1105_v38  ;;  %v1126_v38 = vld [vmem:[#allocation2 + $0x280] sm:$0xff] }
 0xf55   :  { %2397 = vmatprep.subr.mxu1 %v1104_v58 }
 0xf56   :  { %2398 = vmatpush3.msra.mxu1 %v1104_v58  ;;  %v1125_v58 = vld [vmem:[#allocation2 + $0x278] sm:$0xff] }
0x1005   :  { %v2362_v40 = vpop.f32.mrf.mxu1 }
0x1006   :  { %v1640_v56 = vmul.f32 %v2972_v14, %v2362_v40 }
0x1007   :  { %v1600_v9 = vpop.f32.mrf.mxu1 }
0x1008   :  { %v1639_v54 = vmul.f32 %v2960_v46, %v1600_v9 }
0x1009   :  { %v2365_v47 = vpop.f32.mrf.mxu1 }
0x100a   :  { %v1642_v57 = vmul.f32 %v2988_v45, %v2365_v47 }
0x100b   :  { %v1610_v49 = vpop.f32.mrf.mxu1 }
0x100c   :  { %v1641_v52 = vmul.f32 %v2979_v16, %v1610_v49  ;;  %v1648_v6 = vadd.f32 %v1642_v57, %v1640_v56  ;;  %v1102_v56 = vld [vmem:[#allocation2 + $0x1c0] sm:$0xff] }
0x100d   :  { %v2368_v59 = vpop.f32.mrf.mxu1 }
0x100e   :  { %v1644_v61 = vmul.f32 %v3004_v7, %v2368_v59  ;;  %v1647_v5 = vadd.f32 %v1641_v52, %v1639_v54 }
0x100f   :  { %v1620_v53 = vpop.f32.mrf.mxu1 }
0x1010   :  { %v1643_v55 = vmul.f32 %v2995_v20, %v1620_v53  ;;  %v1650_v19 = vadd.f32 %v1648_v6, %v1644_v61  ;;  %v1101_v61 = vld [vmem:[#allocation2 + $0x1b8] sm:$0xff] }
0x1011   :  { %v2371_v62 = vpop.f32.mrf.mxu1 }
0x1012   :  { %v1646_v11 = vmul.f32 %v3020_v25, %v2371_v62  ;;  %v1649_v17 = vadd.f32 %v1647_v5, %v1643_v55  ;;  %v1103_v55 = vld [vmem:[#allocation2 + $0x1c8] sm:$0xff]  ;;  %v1779_v62 = vrot.slane %v2939_v8, %v825_v26 }
0x1013   :  { %v1630_v15 = vpop.f32.mrf.mxu1  ;;  %2399 = vmatprep.subr.mxu1 %v1103_v55 }
0x1014   :  { %v1645_v16 = vmul.f32 %v3011_v23, %v1630_v15  ;;  %v1652_v21 = vadd.f32 %v1650_v19, %v1646_v11  ;;  %2400 = vmatpush3.msra.mxu1 %v1103_v55  ;;  %v1785_v11 = vrot.slane %v2939_v8, %v831_v27  ;;  %v1100_v15 = vld [vmem:[#allocation2 + $0x1b0] sm:$0xff] }
0x1015   :  { %2401 = vmatprep.subr.mxu1 %v1102_v56  ;;  %v1132_v55 = vld [vmem:[#allocation2 + $0x2b0] sm:$0xff] }
0x1016   :  { %v1651_v45 = vadd.f32 %v1649_v17, %v1645_v16  ;;  %2402 = vmatpush3.msra.mxu1 %v1102_v56  ;;  %v1131_v56 = vld [vmem:[#allocation2 + $0x2a8] sm:$0xff] }
0x1017   :  { %2403 = vmatprep.subr.mxu1 %v1101_v61 }
0x1018   :  { %2380 = vmatprep.mubr.msk.f32.mxu0 %vm181_vm1, %v1651_v45  ;;  %2404 = vmatpush3.msra.mxu1 %v1101_v61  ;;  %v1130_v61 = vld [vmem:[#allocation2 + $0x2a0] sm:$0xff] }
0x1019   :  { %2381 = vmatmul.mubr.msk.f32.vlgmr.msra.gmra.mxu0 %vm181_vm1, %v1652_v21  ;;  %2405 = vmatprep.subr.mxu1 %v1100_v15 }
0x101a   :  { %2406 = vmatpush3.msra.mxu1 %v1100_v15  ;;  %1940 = vmatpush1.msra.mxu0 %v1127_v30 }
0x101b   :  { %1941 = vmatprep.subr.mxu0 %v2592_v2 }
0x101c   :  { %1942 = vmatpush1.msra.mxu0 %v1126_v38 }
0x101d   :  { %1943 = vmatprep.subr.mxu0 %v2592_v2 }
0x101e   :  { %1944 = vmatpush1.msra.mxu0 %v1125_v58 }
0x101f   :  { %1945 = vmatprep.subr.mxu0 %v2592_v2 }
0x10d9   :  { %v2382_v46 = vpop.f32.mrf.mxu0 }
0x10da   :  { %v3089_v14 = vadd.f32 %v2382_v46, %v2931_v18 }
0x10db   :  { %v1725_v20 = vpop.f32.mrf.mxu0 }
0x10dc   :  { %v3092_v7 = vadd.f32 %v1725_v20, %v2926_v12  ;;  %v1739_v25 = vsel %vm181_vm1, %v3089_v14, 0.0 }
0x10dd   :  { %1740 = vadd.xlane.f32.xlu0 %v1739_v25 }
0x10de   :  { %v1736_v23 = vsel %vm181_vm1, %v3092_v7, 0.0 }
0x10df   :  { %1737 = vadd.xlane.f32.xlu1 %v1736_v23 }
0x1166   :  { %v1741_v22 = vpop.xlane.xlu0 %1740 }
0x1167   :  { %v1743_v24 = vmul.f32 0.03125, %v1741_v22 }
0x1168   :  { %v1738_v44 = vpop.xlane.xlu1 %1737 }
0x1169   :  { %v3099_v28 = vsub.f32 %v3089_v14, %v1743_v24  ;;  %v1742_v18 = vmul.f32 0.03125, %v1738_v44 }
0x116b   :  { %v3102_v1 = vsub.f32 %v3092_v7, %v1742_v18  ;;  %v1747_v12 = vmul.f32 %v3099_v28, %v3099_v28 }
0x116d   :  { %v1751_v63 = vsel %vm181_vm1, %v1747_v12, 0.0  ;;  %v1746_v29 = vmul.f32 %v3102_v1, %v3102_v1 }
0x116e   :  { %1752 = vadd.xlane.f32.xlu1 %v1751_v63 }
0x116f   :  { %v1748_v31 = vsel %vm181_vm1, %v1746_v29, 0.0 }
0x1170   :  { %1749 = vadd.xlane.f32.xlu0 %v1748_v31 }
0x11f7   :  { %v1753_v33 = vpop.xlane.xlu1 %1752 }
0x11f8   :  { %v1755_v13 = vmul.f32 0.032258064, %v1753_v33  ;;  %v1124_v33 = vld [vmem:[#allocation2 + $0x270] sm:$0xff] }
0x11f9   :  { %v1750_v39 = vpop.xlane.xlu0 %1749  ;;  %1946 = vmatpush1.msra.mxu0 %v1124_v33 }
0x11fa   :  { %2509 = vrsqrt.f32 %v1755_v13  ;;  %v1754_v41 = vmul.f32 0.032258064, %v1750_v39  ;;  %vm1765_vm0 = vcmp.eq.f32.partialorder %v1755_v13, inf  ;;  %v1768_v42 = vand.u32 2147483648, %v1755_v13  ;;  %1947 = vmatprep.subr.mxu0 %v2592_v2  ;;  %v1122_v39 = vld [vmem:[#allocation2 + $0x260] sm:$0xff] }
0x11fb   :  { %vm1767_vm4 = vcmp.eq.f32.partialorder %v1755_v13, 0.0 }
0x11fc   :  { %2511 = vrsqrt.f32 %v1754_v41  ;;  %vm1758_vm5 = vcmp.eq.f32.partialorder %v1754_v41, inf  ;;  %v1761_v52 = vand.u32 2147483648, %v1754_v41  ;;  %vm1760_vm6 = vcmp.eq.f32.partialorder %v1754_v41, 0.0 }
0x1207   :  { %v2510_v4 = vpop.eup %2509 }
0x1208   :  { %v1764_v37 = vmul.f32 %v2510_v4, %v1755_v13  ;;  %v1120_v4 = vld [vmem:[#allocation2 + $0x250] sm:$0xff] }
0x1209   :  { %v2512_v40 = vpop.eup %2511 }
0x120a   :  { %v1766_v9 = vsel %vm1765_vm0, %v1755_v13, %v1764_v37  ;;  %v1757_v49 = vmul.f32 %v2512_v40, %v1754_v41  ;;  %v1123_v13 = vld [vmem:[#allocation2 + $0x268] sm:$0xff]  ;;  %v1117_v40 = vld [vmem:[#allocation2 + $0x238] sm:$0xff] }
0x120b   :  { %v1769_v47 = vsel %vm1767_vm4, %v1768_v42, %v1766_v9  ;;  %1948 = vmatpush1.msra.mxu0 %v1123_v13  ;;  %v1119_v37 = vld [vmem:[#allocation2 + $0x248] sm:$0xff]  ;;  %v1118_v42 = vld [vmem:[#allocation2 + $0x240] sm:$0xff]  ;;  %v1116_v9 = vld [vmem:[#allocation2 + $0x230] sm:$0xff] }
0x120c   :  { %v1771_v59 = vadd.f32 1e-06, %v1769_v47  ;;  %v1759_v57 = vsel %vm1758_vm5, %v1754_v41, %v1757_v49  ;;  %1949 = vmatprep.subr.mxu0 %v2592_v2  ;;  %v1121_v41 = vld [vmem:[#allocation2 + $0x258] sm:$0xff]  ;;  %v1115_v47 = vld [vmem:[#allocation2 + $0x228] sm:$0xff]  ;;  %v1114_v49 = vld [vmem:[#allocation2 + $0x220] sm:$0xff] }
0x120d   :  { %v1762_v53 = vsel %vm1760_vm6, %v1761_v52, %v1759_v57  ;;  %1950 = vmatpush1.msra.mxu0 %v1122_v39  ;;  %v1112_v52 = vld [vmem:[#allocation2 + $0x210] sm:$0xff]  ;;  %v1135_v57 = vld [vmem:[#allocation2 + $0x2c8] sm:$0xff] }
0x120e   :  { %2513 = vrcp.f32 %v1771_v59  ;;  %v1770_v54 = vadd.f32 1e-06, %v1762_v53  ;;  %1951 = vmatprep.subr.mxu0 %v2592_v2  ;;  %v1113_v59 = vld [vmem:[#allocation2 + $0x218] sm:$0xff]  ;;  %v1134_v53 = vld [vmem:[#allocation2 + $0x2c0] sm:$0xff] }
0x120f   :  { %1952 = vmatpush1.msra.mxu0 %v1121_v41 }
0x1210   :  { %2515 = vrcp.f32 %v1770_v54  ;;  %1953 = vmatprep.subr.mxu0 %v2592_v2  ;;  %v1133_v54 = vld [vmem:[#allocation2 + $0x2b8] sm:$0xff] }
0x1211   :  { %1954 = vmatpush1.msra.mxu0 %v1120_v4 }
0x1212   :  { %1955 = vmatprep.subr.mxu0 %v2592_v2 }
0x1213   :  { %1956 = vmatpush1.msra.mxu0 %v1119_v37 }
0x1214   :  { %1957 = vmatprep.subr.mxu0 %v2592_v2 }
0x1215   :  { %1958 = vmatpush1.msra.mxu0 %v1118_v42 }
0x1216   :  { %1959 = vmatprep.subr.mxu0 %v2592_v2 }
0x1217   :  { %1960 = vmatpush1.msra.mxu0 %v1117_v40 }
0x1218   :  { %1961 = vmatprep.subr.mxu0 %v2592_v2 }
0x1219   :  { %1962 = vmatpush1.msra.mxu0 %v1116_v9 }
0x121a   :  { %1963 = vmatprep.subr.mxu0 %v2592_v2 }
0x121b   :  { %v2514_v5 = vpop.eup %2513  ;;  %1964 = vmatpush1.msra.mxu0 %v1115_v47 }
0x121c   :  { %v1775_v6 = vmul.f32 %v2514_v5, %v3099_v28  ;;  %1965 = vmatprep.subr.mxu0 %v2592_v2  ;;  %v1128_v5 = vld [vmem:[#allocation2 + $0x290] sm:$0xff] }
0x121d   :  { %v2516_v17 = vpop.eup %2515  ;;  %1966 = vmatpush1.msra.mxu0 %v1114_v49 }
0x121e   :  { %v1781_v16 = vmul.f32 %v1779_v62, %v1775_v6  ;;  %v1773_v19 = vmul.f32 %v2516_v17, %v3102_v1  ;;  %1967 = vmatprep.subr.mxu0 %v2592_v2  ;;  %v1823_v6 = vrot.slane %v2939_v8, %v894_v34 }
0x121f   :  { %1968 = vmatpush1.msra.mxu0 %v1113_v59 }
0x1220   :  { %v1787_v45 = vadd.f32 %v1785_v11, %v1781_v16  ;;  %v1780_v21 = vmul.f32 %v1779_v62, %v1773_v19  ;;  %1969 = vmatprep.subr.mxu0 %v2592_v2  ;;  %v1129_v62 = vld [vmem:[#allocation2 + $0x298] sm:$0xff] }
0x1221   :  { %1970 = vmatpush1.msra.mxu0 %v1112_v52 }
0x1222   :  { %1804 = vrot.lane.b32.xlu1 %v1787_v45, %s2591_s17  ;;  %v1786_v26 = vadd.f32 %v1785_v11, %v1780_v21  ;;  %v1789_v46 = vrot.slane %v1787_v45, 7  ;;  %v1795_v20 = vrot.slane %v1787_v45, 1  ;;  %1987 = vmatprep.subr.mxu0 %v2592_v2 }
0x1223   :  { %1988 = vmatpush2.msra.mxu0 %v1135_v57 }
0x1224   :  { %1802 = vrot.lane.b32.xlu0 %v1786_v26, %s2591_s17  ;;  %v1788_v25 = vrot.slane %v1786_v26, 7  ;;  %v1794_v23 = vrot.slane %v1786_v26, 1  ;;  %1989 = vmatprep.subr.mxu0 %v2592_v2 }
0x1225   :  { %1990 = vmatpush2.msra.mxu0 %v1134_v53 }
0x1226   :  { %v1797_v27 = vsel %vm856_vm11, %v1795_v20, %v1794_v23  ;;  %v1796_v22 = vsel %vm856_vm11, %v1794_v23, %v1795_v20  ;;  %v1790_v24 = vsel %vm839_vm10, %v1788_v25, %v1789_v46  ;;  %v1791_v44 = vsel %vm839_vm10, %v1789_v46, %v1788_v25  ;;  %1991 = vmatprep.subr.mxu0 %v2592_v2 }
0x1227   :  { %v1799_v28 = vmul.f32 %v1797_v27, %v2859_v48  ;;  %v1798_v18 = vmul.f32 %v1796_v22, %v2846_v10  ;;  %v1793_v63 = vmul.f32 %v1790_v24, %v2865_v51  ;;  %v1792_v29 = vmul.f32 %v1791_v44, %v2863_v50  ;;  %1992 = vmatpush2.msra.mxu0 %v1133_v54 }
0x1228   :  { %1993 = vmatprep.subr.mxu0 %v2592_v2 }
0x1229   :  { %1812 = vrot.lane.b32.xlu0 %v1799_v28, %s2589_s6  ;;  %1810 = vrot.lane.b32.xlu1 %v1798_v18, %s2589_s6 }
0x122a   :  { %1994 = vmatpush2.msra.mxu0 %v1132_v55 }
0x122b   :  { %1995 = vmatprep.subr.mxu0 %v2592_v2 }
0x122c   :  { %1996 = vmatpush2.msra.mxu0 %v1131_v56 }
0x122d   :  { %1997 = vmatprep.subr.mxu0 %v2592_v2 }
0x122e   :  { %1998 = vmatpush2.msra.mxu0 %v1130_v61 }
0x122f   :  { %1999 = vmatprep.subr.mxu0 %v2592_v2 }
0x1230   :  { %2000 = vmatpush2.msra.mxu0 %v1129_v62 }
0x1231   :  { %2001 = vmatprep.subr.mxu0 %v2592_v2 }
0x1232   :  { %2002 = vmatpush2.msra.mxu0 %v1128_v5  ;;  %v2143_v5 = vld [vmem:[%s3207_s0 + $0x50] ss:$0 sm:$0xff] }
0x1294   :  { %v1805_v12 = vpop.permute.xlu1 %1804 }
0x1295   :  { %v1817_v31 = vsel %vm181_vm1, %v1793_v63, %v1805_v12 }
0x1296   :  { %v1803_v1 = vpop.permute.xlu0 %1802 }
0x1297   :  { %v1816_v32 = vsel %vm181_vm1, %v1792_v29, %v1803_v1 }
0x129b   :  { %v1813_v35 = vpop.permute.xlu0 %1812  ;;  %v1811_v36 = vpop.permute.xlu1 %1810 }
0x129c   :  { %v1819_v0 = vsel %vm889_vm12, %v1817_v31, %v1813_v35  ;;  %v1818_v3 = vsel %vm889_vm12, %v1816_v32, %v1811_v36 }
0x129d   :  { %2407 = vmatprep.mubr.msk.f32.mxu1 %vm896_vm13, %v1818_v3 }
0x129e   :  { %2408 = vmatmul.mubr.msk.f32.vlgmr.msra.gmra.mxu1 %vm896_vm13, %v1819_v0 }
0x135e   :  { %v2409_v11 = vpop.f32.mrf.mxu1 }
0x135f   :  { %v1902_v15 = vadd.f32 %v2409_v11, %v1823_v6  ;;  %v2144_v11 = vld [vmem:[%s3207_s0 + $0x58] ss:$0 sm:$0xff] }
0x1360   :  { %v1896_v17 = vpop.f32.mrf.mxu1 }
0x1361   :  { %v1906_v16 = vmax.f32 %v1902_v15, 0.0  ;;  %v1897_v19 = vadd.f32 %v1896_v17, %v1823_v6 }
0x1363   :  { %v1905_v45 = vmax.f32 %v1897_v19, 0.0  ;;  %1923 = vrot.lane.b32.xlu0 %v1906_v16, %s2589_s6  ;;  %v1908_v21 = vrot.slane %v1906_v16, 7  ;;  %v1914_v26 = vrot.slane %v1906_v16, 1 }
0x1365   :  { %v1907_v46 = vrot.slane %v1905_v45, 7  ;;  %v1913_v20 = vrot.slane %v1905_v45, 1  ;;  %1921 = vrot.lane.b32.xlu1 %v1905_v45, %s2589_s6 }
0x1367   :  { %v1915_v2 = vsel %vm856_vm11, %v1913_v20, %v1914_v26  ;;  %v1910_v34 = vsel %vm839_vm10, %v1908_v21, %v1907_v46  ;;  %v1916_v25 = vsel %vm856_vm11, %v1914_v26, %v1913_v20  ;;  %v1909_v23 = vsel %vm839_vm10, %v1907_v46, %v1908_v21 }
0x1368   :  { %v1917_v27 = vmul.f32 %v1915_v2, %v2846_v10  ;;  %v1911_v22 = vmul.f32 %v1910_v34, %v2863_v50  ;;  %v1918_v28 = vmul.f32 %v1916_v25, %v2859_v48  ;;  %v1912_v1 = vmul.f32 %v1909_v23, %v2865_v51 }
0x1369   :  { %v1932_v10 = vrot.slane %v2939_v8, %v1004_v60 }
0x136a   :  { %2141 = vmatprep.mubr.msk.f32.mxu0 %vm889_vm12, %v1917_v27 }
0x13d5   :  { %v1924_v18 = vpop.permute.xlu0 %1923 }
0x13d6   :  { %v1928_v12 = vsel %vm889_vm12, %v1912_v1, %v1924_v18 }
0x13d7   :  { %v1922_v24 = vpop.permute.xlu1 %1921 }
0x13d8   :  { %v1927_v44 = vsel %vm889_vm12, %v1911_v22, %v1922_v24 }
0x13d9   :  { %2004 = vmatmul.mubr.f32.vlgmr.msra.gmra.mxu0 %v1927_v44 }
0x13da   :  { %2142 = vmatprep.mubr.msk.f32.mxu0 %vm889_vm12, %v1918_v28 }
0x13dd   :  { %2009 = vmatmul.mubr.f32.gmra.mxu0 %v1928_v12 }
0x1499   :  { %v2005_v63 = vpop.f32.mrf.mxu0 }
0x149a   :  { %v2006_v50 = vadd.f32 %v2005_v63, %v1932_v10 }
0x149b   :  { %v2007_v29 = vpop.f32.mrf.mxu0 }
0x149c   :  { %v2014_v31 = vmax.f32 %v2006_v50, 0.0 }
0x149d   :  { %v2010_v32 = vpop.f32.mrf.mxu0 }
0x149e   :  { %v2011_v35 = vadd.f32 %v2010_v32, %v1932_v10  ;;  %v2016_v48 = vadd.f32 %v2014_v31, %v3092_v7 }
0x149f   :  { %v2012_v36 = vpop.f32.mrf.mxu0 }
0x14a0   :  { %v2015_v0 = vmax.f32 %v2011_v35, 0.0  ;;  %v2018_v3 = vsel %vm181_vm1, %v2016_v48, 0.0 }
0x14a1   :  { %2019 = vadd.xlane.f32.xlu1 %v2018_v3 }
0x14a2   :  { %v2017_v51 = vadd.f32 %v2015_v0, %v3089_v14 }
0x14a4   :  { %v2021_v30 = vsel %vm181_vm1, %v2017_v51, 0.0 }
0x14a5   :  { %2022 = vadd.xlane.f32.xlu0 %v2021_v30 }
0x152a   :  { %v2020_v43 = vpop.xlane.xlu1 %2019 }
0x152b   :  { %v2024_v60 = vmul.f32 0.03125, %v2020_v43 }
0x152d   :  { %v2026_v8 = vsub.f32 %v2016_v48, %v2024_v60 }
0x152e   :  { %v2023_v38 = vpop.xlane.xlu0 %2022 }
0x152f   :  { %v2025_v58 = vmul.f32 0.03125, %v2023_v38  ;;  %v2028_v33 = vmul.f32 %v2026_v8, %v2026_v8 }
0x1531   :  { %v2027_v13 = vsub.f32 %v2017_v51, %v2025_v58  ;;  %v2030_v39 = vsel %vm181_vm1, %v2028_v33, 0.0 }
0x1532   :  { %2031 = vadd.xlane.f32.xlu0 %v2030_v39 }
0x1533   :  { %v2029_v7 = vmul.f32 %v2027_v13, %v2027_v13 }
0x1535   :  { %v2033_v41 = vsel %vm181_vm1, %v2029_v7, 0.0 }
0x1536   :  { %2034 = vadd.xlane.f32.xlu1 %v2033_v41 }
0x15bb   :  { %v2032_v4 = vpop.xlane.xlu0 %2031 }
0x15bc   :  { %v2036_v37 = vmul.f32 0.032258064, %v2032_v4 }
0x15be   :  { %2517 = vrsqrt.f32 %v2036_v37  ;;  %vm2040_vm7 = vcmp.eq.f32.partialorder %v2036_v37, inf  ;;  %v2043_v47 = vand.u32 2147483648, %v2036_v37  ;;  %vm2042_vm8 = vcmp.eq.f32.partialorder %v2036_v37, 0.0 }
0x15bf   :  { %v2035_v14 = vpop.xlane.xlu1 %2034 }
0x15c0   :  { %v2037_v42 = vmul.f32 0.032258064, %v2035_v14 }
0x15c2   :  { %2519 = vrsqrt.f32 %v2037_v42  ;;  %vm2047_vm9 = vcmp.eq.f32.partialorder %v2037_v42, inf  ;;  %v2050_v54 = vand.u32 2147483648, %v2037_v42  ;;  %vm2049_vm10 = vcmp.eq.f32.partialorder %v2037_v42, 0.0 }
0x15cb   :  { %v2518_v40 = vpop.eup %2517 }
0x15cc   :  { %v2039_v9 = vmul.f32 %v2518_v40, %v2036_v37 }
0x15ce   :  { %v2041_v49 = vsel %vm2040_vm7, %v2036_v37, %v2039_v9 }
0x15cf   :  { %v2520_v59 = vpop.eup %2519  ;;  %v2044_v52 = vsel %vm2042_vm8, %v2043_v47, %v2041_v49 }
0x15d0   :  { %v2052_v57 = vadd.f32 1e-06, %v2044_v52  ;;  %v2046_v53 = vmul.f32 %v2520_v59, %v2037_v42 }
0x15d2   :  { %2521 = vrcp.f32 %v2052_v57  ;;  %v2048_v55 = vsel %vm2047_vm9, %v2037_v42, %v2046_v53 }
0x15d3   :  { %v2051_v56 = vsel %vm2049_vm10, %v2050_v54, %v2048_v55 }
0x15d4   :  { %v2053_v61 = vadd.f32 1e-06, %v2051_v56 }
0x15d6   :  { %2523 = vrcp.f32 %v2053_v61 }
0x15df   :  { %v2522_v62 = vpop.eup %2521 }
0x15e0   :  { %v2055_v6 = vmul.f32 %v2522_v62, %v2026_v8 }
0x15e2   :  { %v2062_v15 = vmul.f32 %v2143_v5, %v2055_v6 }
0x15e3   :  { %v2524_v17 = vpop.eup %2523 }
0x15e4   :  { %v2057_v16 = vmul.f32 %v2524_v17, %v2027_v13  ;;  %v2068_v19 = vadd.f32 %v2144_v11, %v2062_v15 }
0x15e6   :  { %v2063_v45 = vmul.f32 %v2143_v5, %v2057_v16  ;;  %2070 = vst.msk [vmem:[#allocation5] sm:$0xff] %vm181_vm1, %v2068_v19 }
0x15e8   :  { %v2069_v21 = vadd.f32 %v2144_v11, %v2063_v45 }
0x15ea   :  { %2071 = vst.msk [vmem:[#allocation5 + $0x8] sm:$0xff] %vm181_vm1, %v2069_v21 }
0x15eb   :  { %2572 = shalt.err (!%p2569_p9)
}
0x15ec   :  { %2083 = dma.vmem_to_hbm [thread:$0]  %s2078_s26, 256, %s3209_s2, [#allocation4], %s2586_s12, %s2586_s12, %s2587_s13  }
0x15ed   :  { %2583 = dma.done.wait [#allocation4], 256  }
0x15ee   :  { %2584 = vsyncadd [#allocation4], 4294967040 }
0x15ef   :  { %2087 = vsyncpa [#allocation3], 1 }
0x15f0   :  { %2088 = vsyncpa [#allocation4], 1 }

</bundles_post_ra>
